<compile_context>
chip_gen: v7x
topology: tpu7x:2x2x1
jax: 0.10.0
libtpu: 0.0.40
codegen_flags: <defaults>
</compile_context>

<pallas_src>
import numpy as np
import jax
import jax.numpy as jnp
from jax.experimental import pallas as pl
from jax.experimental.pallas import tpu as pltpu

BN_EPS = 1e-5          # PyTorch BatchNorm2d default
SUBLANE = 8            # f32 sublane tile (channel groups padded to this)


# ----------------------------- static helpers -------------------------------

def _round_up(x, m):
    return (x + m - 1) // m * m


def _contiguous_runs(idxs):
    """Group a sorted tuple of feature indices into (start, length) runs."""
    runs = []
    start = prev = idxs[0]
    for i in idxs[1:]:
        if i == prev + 1:
            prev = i
        else:
            runs.append((start, prev - start + 1))
            start = prev = i
    runs.append((start, prev - start + 1))
    return runs


def _tap_masks(H, W, reps):
    """(9, reps*H*W) f32 validity masks for the 3x3 taps, tiled per sample.

    mask[k, b*H*W + p] == 1 iff pixel p's neighbour at tap k stays inside the
    image.  Because a lane-roll read only crosses a sample boundary when the
    neighbour is off-image, the tiled mask also kills all cross-sample leakage.
    """
    yy, xx = np.meshgrid(np.arange(H), np.arange(W), indexing="ij")
    yy, xx = yy.reshape(-1), xx.reshape(-1)
    m = np.zeros((9, H * W), np.float32)
    k = 0
    for dy in (-1, 0, 1):
        for dx in (-1, 0, 1):
            ok = (yy + dy >= 0) & (yy + dy < H) & (xx + dx >= 0) & (xx + dx < W)
            m[k] = ok.astype(np.float32)
            k += 1
    return jnp.asarray(np.tile(m, (1, reps)))


# ------------------------------ Pallas kernel --------------------------------

def _make_theta_kernel(segments, bias_folded, row_off_pad, layer_chans,
                       chan_pad, keep, H, W, batch_tile):
    """Build the fused ThetaBlock kernel (all structure is static)."""
    HW = H * W
    L = batch_tile * HW
    nlayers = len(segments)
    taps = [(dy, dx) for dy in (-1, 0, 1) for dx in (-1, 0, 1)]

    def kernel(*refs):
        x_ref, mask_ref = refs[0], refs[1]
        prm = refs[2:-2]                      # 5 refs per layer
        out_ref, feat_ref = refs[-2], refs[-1]

        c0_real, c0_pad = layer_chans[0], chan_pad[0]
        # Stage the block input: samples laid side-by-side on the lane axis.
        for b in range(batch_tile):
            feat_ref[0:c0_real, b * HW:(b + 1) * HW] = x_ref[b]
        if c0_pad > c0_real:
            # Padding rows must be *zero* (not stale VMEM): they feed BN1 and
            # host the constant-one bias channel.
            feat_ref[c0_real:c0_pad, :] = jnp.zeros((c0_pad - c0_real, L),
                                                    jnp.float32)

        # Hoist the 9 tap-mask rows (loaded once, reused by every layer).
        mrows = [mask_ref[k:k + 1, :] for k in range(9)]

        for l in range(nlayers):
            s1, b1, w1f, b2, w2t = prm[5 * l:5 * l + 5]

            # ---- BN1 + ReLU + 1x1 conv (BN2 scale folded into w1f, BN2 shift
            #      folded in via the constant-one bias channel) ----------------
            y = None
            for (r0, nr, c0) in segments[l]:
                part = feat_ref[r0:r0 + nr, :]
                h = jnp.maximum(part * s1[c0:c0 + nr, :] + b1[c0:c0 + nr, :],
                                0.0)
                contrib = jnp.dot(w1f[:, c0:c0 + nr], h.astype(jnp.bfloat16),
                                  preferred_element_type=jnp.float32)
                y = contrib if y is None else y + contrib
            if not bias_folded[l]:
                y = y + b2[...]
            z = jnp.maximum(y, 0.0)                       # (cmid, L) f32

            # ---- 3x3 conv (padding=1): accumulate 9 lane-rolled taps ---------
            outl = None
            for k, (dy, dx) in enumerate(taps):
                off = dy * W + dx
                if off == 0:
                    tap = z.astype(jnp.bfloat16)
                else:
                    tap = (pltpu.roll(z, shift=(-off) % L, axis=1)
                           * mrows[k]).astype(jnp.bfloat16)
                part = jnp.dot(w2t[k], tap, preferred_element_type=jnp.float32)
                outl = part if outl is None else outl + part

            dst = row_off_pad[l + 1]
            # w2t's zero-padded rows make this group's padding rows exactly 0,
            # so the store is a full aligned slab.
            feat_ref[dst:dst + chan_pad[l + 1], :] = outl

        # ---- theta-block output: kept feature maps, written NCHW-flat --------
        for b in range(batch_tile):
            col = b * HW
            dst = 0
            for i in keep:
                c = layer_chans[i]
                r0 = row_off_pad[i]
                out_ref[b, dst:dst + c, :] = feat_ref[r0:r0 + c, col:col + HW]
                dst += c

    return kernel


# --------------------------- parameter helpers -------------------------------

def _init_bn_folded(key, c):
    k1, k2, k3, k4 = jax.random.split(key, 4)
    gamma = 1.0 + 0.1 * jax.random.normal(k1, (c,), jnp.float32)
    beta = 0.1 * jax.random.normal(k2, (c,), jnp.float32)
    mean = 0.1 * jax.random.normal(k3, (c,), jnp.float32)
    var = 1.0 + 0.1 * jnp.abs(jax.random.normal(k4, (c,), jnp.float32))
    scale = gamma / jnp.sqrt(var + BN_EPS)
    shift = beta - mean * scale
    return scale, shift


def _init_layer_params(key, cin, cmid, cout):
    kb1, kw1, kb2, kw2 = jax.random.split(key, 4)
    s1, b1 = _init_bn_folded(kb1, cin)
    s2, b2 = _init_bn_folded(kb2, cmid)
    # PyTorch Conv2d weights: 1x1 -> (cmid, cin, 1, 1); 3x3 -> (cout, cmid, 3, 3).
    w1 = 0.1 * jax.random.normal(kw1, (cmid, cin), jnp.float32)
    w2 = 0.1 * jax.random.normal(kw2, (cout, cmid, 3, 3), jnp.float32)
    # Fold BN2 scale into the 1x1 rows: relu(s2*(W1 h) + t2) == relu(w1f h + b2).
    return {"s1": s1, "b1": b1, "w1f": w1 * s2[:, None], "b2": b2, "w2": w2}


# -------------------------------- ThetaBlock ---------------------------------

class ThetaBlockPallas:
    def __init__(self, in_channels_num, growth_rate, nlayers, angle, keepbase,
                 mid_mult, key):
        self.angle = angle
        self.keepBase = keepbase
        self.growth_rate = growth_rate
        self.start = in_channels_num
        self.mid_mult = mid_mult
        self.nlayers = nlayers
        self.cmid = int(mid_mult * growth_rate)
        self.layer_ins = [in_channels_num]
        self.links = []
        self.params = []
        keys = jax.random.split(key, nlayers)
        for l in range(nlayers):
            cons, cin = self.get_connects(l + 1)
            self.links.append(tuple(cons))
            cout = int(growth_rate)
            self.params.append(_init_layer_params(keys[l], cin, self.cmid, cout))
            self.layer_ins.append(cout)

        # Final output selection (mirrors the PyTorch forward tail exactly).
        t = nlayers + 1
        thresh = int(angle * t)
        self.keep = tuple(i for i in range(t)
                          if (i == 0 and keepbase) or i >= thresh or i == 0)
        self.out_channels = sum(self.layer_ins[i] for i in self.keep)

        # ---- static sublane-padded feature layout ---------------------------
        self.chan_pad = tuple(_round_up(c, SUBLANE) for c in self.layer_ins)
        off = [0]
        for c in self.chan_pad:
            off.append(off[-1] + c)
        self.row_off_pad = tuple(off)

        segments, folded, layer_args = [], [], []
        for l in range(nlayers):
            segs, args, f = self._build_layer(l)
            segments.append(segs)
            folded.append(f)
            layer_args.append(args)
        self.segments = tuple(segments)
        self.bias_folded = tuple(folded)
        self.kernel_layer_args = layer_args

    # Same selection rule as the PyTorch module.
    def get_connects(self, layer):
        thresh = int(self.angle * layer)
        cons = [i for i in range(layer) if i >= thresh or i == 0]
        channels = sum(self.layer_ins[i] for i in cons)
        return cons, channels

    def _build_layer(self, l):
        """Build padded (sublane-aligned, bf16) kernel params for layer l."""
        p = self.params[l]
        link = self.links[l]
        cmid = self.cmid
        cout = self.layer_ins[l + 1]
        cout_pad = self.chan_pad[l + 1]

        # Real / padded column offsets of each linked feature group inside the
        # layer's concatenated input.
        real_off, pad_off = {}, {}
        ro = po = 0
        for i in link:
            real_off[i], pad_off[i] = ro, po
            ro += self.layer_ins[i]
            po += self.chan_pad[i]
        cin_pad = po

        s1 = np.zeros((cin_pad, 1), np.float32)
        b1 = np.zeros((cin_pad, 1), np.float32)
        w1 = np.zeros((cmid, cin_pad), np.float32)
        s1r, b1r = np.asarray(p["s1"]), np.asarray(p["b1"])
        w1r, b2r = np.asarray(p["w1f"]), np.asarray(p["b2"])
        for i in link:
            c = self.layer_ins[i]
            s1[pad_off[i]:pad_off[i] + c, 0] = s1r[real_off[i]:real_off[i] + c]
            b1[pad_off[i]:pad_off[i] + c, 0] = b1r[real_off[i]:real_off[i] + c]
            w1[:, pad_off[i]:pad_off[i] + c] = w1r[:, real_off[i]:real_off[i] + c]

        # Fold BN2's shift into the matmul through a constant-one bias channel
        # hosted by the (always-zero) first padding row of feature group 0
        # (group 0 is linked by every layer).
        folded = self.chan_pad[0] > self.layer_ins[0]
        if folded:
            bias_col = pad_off[0] + self.layer_ins[0]
            b1[bias_col, 0] = 1.0                          # relu(0*feat + 1) == 1
            w1[:, bias_col] = b2r

        # 3x3 weight, tap-major, rows zero-padded to cout_pad.
        w2 = np.asarray(p["w2"])                           # (cout, cmid, 3, 3)
        w2t = np.zeros((9, cout_pad, cmid), np.float32)
        k = 0
        for ky in range(3):
            for kx in range(3):
                w2t[k, :cout, :] = w2[:, :, ky, kx]
                k += 1

        # Contiguous feature-group runs -> (feat_row0, rows, col0) segments.
        segs = []
        col = 0
        for (s, n) in _contiguous_runs(link):
            r0 = self.row_off_pad[s]
            nr = self.row_off_pad[s + n] - r0
            segs.append((r0, nr, col))
            col += nr

        args = (jnp.asarray(s1), jnp.asarray(b1),
                jnp.asarray(w1, dtype=jnp.bfloat16),
                jnp.asarray(b2r.reshape(cmid, 1)),
                jnp.asarray(w2t, dtype=jnp.bfloat16))
        return tuple(segs), args, folded

    def __call__(self, x_nchw, batch_tile=None):
        N, C, H, W = x_nchw.shape
        assert C == self.start
        HW = H * W
        if batch_tile is None:
            # Widest lane tiles while keeping >=2 "parallel" grid steps (v7x
            # megacore); pick the largest divisor of N that satisfies this.
            batch_tile = max(1, N // 2)
        while N % batch_tile:
            batch_tile -= 1
        Bt = batch_tile
        L = Bt * HW

        x = x_nchw.reshape(N, C, HW).astype(jnp.float32)   # NCHW flat, no transpose
        masks = _tap_masks(H, W, Bt)                        # (9, Bt*HW)

        args = [x, masks]
        for la in self.kernel_layer_args:
            args.extend(la)

        kernel = _make_theta_kernel(self.segments, self.bias_folded,
                                    self.row_off_pad, tuple(self.layer_ins),
                                    self.chan_pad, self.keep, H, W, Bt)

        def _const_spec(a):
            nd = a.ndim
            return pl.BlockSpec(a.shape, lambda n, _nd=nd: (0,) * _nd)

        in_specs = [pl.BlockSpec((Bt, C, HW), lambda n: (n, 0, 0))]
        in_specs += [_const_spec(a) for a in args[1:]]

        total_rows = self.row_off_pad[-1]
        # Explicit VMEM budget with headroom (feat scratch + double-buffered
        # I/O blocks + masks/params), clamped well below every generation's
        # physical VMEM (64 MiB on v7x).
        est = (total_rows * L * 4
               + 2 * (Bt * C * HW * 4 + Bt * self.out_channels * HW * 4)
               + 16 * L * 4 + (1 << 20))
        vmem_limit = int(min(max(4 * est, 16 << 20), 40 << 20))

        out = pl.pallas_call(
            kernel,
            out_shape=jax.ShapeDtypeStruct((N, self.out_channels, HW),
                                           jnp.float32),
            grid=(N // Bt,),
            in_specs=in_specs,
            out_specs=pl.BlockSpec((Bt, self.out_channels, HW),
                                   lambda n: (n, 0, 0)),
            scratch_shapes=[pltpu.VMEM((total_rows, L), jnp.float32)],
            compiler_params=pltpu.CompilerParams(
                dimension_semantics=("parallel",),
                vmem_limit_bytes=vmem_limit),
        )(*args)
        return out.reshape(N, self.out_channels, H, W)


# ------------------------- pure-JAX reference (check) ------------------------

def _reference_forward(block, x_nchw):
    """f32 XLA reference using the same folded parameters."""
    hi = jax.lax.Precision.HIGHEST
    feats = [x_nchw.astype(jnp.float32)]
    for l in range(block.nlayers):
        p = block.params[l]
        src = [feats[i] for i in block.links[l]]
        xin = src[0] if len(src) == 1 else jnp.concatenate(src, axis=1)
        cin = xin.shape[1]
        cmid = block.cmid
        h = jnp.maximum(xin * p["s1"].reshape(1, cin, 1, 1)
                        + p["b1"].reshape(1, cin, 1, 1), 0.0)
        y = jnp.einsum("mc,nchw->nmhw", p["w1f"], h, precision=hi)
        z = jnp.maximum(y + p["b2"].reshape(1, cmid, 1, 1), 0.0)
        out = jax.lax.conv_general_dilated(
            z, p["w2"], window_strides=(1, 1), padding=((1, 1), (1, 1)),
            dimension_numbers=("NCHW", "OIHW", "NCHW"), precision=hi)
        feats.append(out)
    return jnp.concatenate([feats[i] for i in block.keep], axis=1)


# ----------------------------------- main -------------------------------------

if __name__ == "__main__":
    key = jax.random.PRNGKey(0)
    k_in, k_params = jax.random.split(key)

    # in_channels=4, growth_rate=4, nlayers=3, angle=0.5, keepbase=True,
    # mid_mult=2  ->  output channels = 4 (input) + 4 + 4 = 12.
    # N=4 gives batch_tile=2 (512-lane slabs) with 2 parallel grid steps.
    N, C, H, W = 4, 4, 16, 16
    x = jax.random.normal(k_in, (N, C, H, W), jnp.float32)

    block = ThetaBlockPallas(in_channels_num=C, growth_rate=4, nlayers=3,
                             angle=0.5, keepbase=True, mid_mult=2, key=k_params)

    out = jax.block_until_ready(block(x))
    assert out.shape == (N, 12, H, W), out.shape
    assert bool(jnp.all(jnp.isfinite(out)))

    # Correctness check vs. the pure-JAX f32 reference (tolerance absorbs the
    # bf16 matmul operands used in-kernel).
    ref = _reference_forward(block, x)
    err = float(jnp.max(jnp.abs(out - ref)))
    assert err < 3e-2, f"kernel/reference mismatch: max abs err = {err}"

    print("KERNEL_OK")
</pallas_src>

<mosaic_0001>
module attributes {stable_mosaic.version = 11 : i64} {
  func.func @kernel(%arg0: i32, %arg1: memref<2x4x256xf32, #tpu.memory_space<vmem>>, %arg2: memref<9x512xf32, #tpu.memory_space<vmem>>, %arg3: memref<8x1xf32, #tpu.memory_space<vmem>>, %arg4: memref<8x1xf32, #tpu.memory_space<vmem>>, %arg5: memref<8x8xbf16, #tpu.memory_space<vmem>>, %arg6: memref<8x1xf32, #tpu.memory_space<vmem>>, %arg7: memref<9x8x8xbf16, #tpu.memory_space<vmem>>, %arg8: memref<16x1xf32, #tpu.memory_space<vmem>>, %arg9: memref<16x1xf32, #tpu.memory_space<vmem>>, %arg10: memref<8x16xbf16, #tpu.memory_space<vmem>>, %arg11: memref<8x1xf32, #tpu.memory_space<vmem>>, %arg12: memref<9x8x8xbf16, #tpu.memory_space<vmem>>, %arg13: memref<24x1xf32, #tpu.memory_space<vmem>>, %arg14: memref<24x1xf32, #tpu.memory_space<vmem>>, %arg15: memref<8x24xbf16, #tpu.memory_space<vmem>>, %arg16: memref<8x1xf32, #tpu.memory_space<vmem>>, %arg17: memref<9x8x8xbf16, #tpu.memory_space<vmem>>, %arg18: memref<2x12x256xf32, #tpu.memory_space<vmem>>, %arg19: memref<32x512xf32, #tpu.memory_space<vmem>>) attributes {dimension_semantics = [#tpu.dimension_semantics<parallel>], iteration_bounds = array<i64: 2>, scalar_prefetch = 0 : i64, scratch_operands = 1 : i64, tpu.core_type = #tpu.core_type<tc>, window_params = [{transform_indices = @transform_0, window_bounds = array<i64: 2, 4, 256>}, {pipeline_mode = #tpu.pipeline_mode<synchronous>, transform_indices = @transform_1, window_bounds = array<i64: 9, 512>}, {pipeline_mode = #tpu.pipeline_mode<synchronous>, transform_indices = @transform_2, window_bounds = array<i64: 8, 1>}, {pipeline_mode = #tpu.pipeline_mode<synchronous>, transform_indices = @transform_3, window_bounds = array<i64: 8, 1>}, {pipeline_mode = #tpu.pipeline_mode<synchronous>, transform_indices = @transform_4, window_bounds = array<i64: 8, 8>}, {pipeline_mode = #tpu.pipeline_mode<synchronous>, transform_indices = @transform_5, window_bounds = array<i64: 8, 1>}, {pipeline_mode = #tpu.pipeline_mode<synchronous>, transform_indices = @transform_6, window_bounds = array<i64: 9, 8, 8>}, {pipeline_mode = #tpu.pipeline_mode<synchronous>, transform_indices = @transform_7, window_bounds = array<i64: 16, 1>}, {pipeline_mode = #tpu.pipeline_mode<synchronous>, transform_indices = @transform_8, window_bounds = array<i64: 16, 1>}, {pipeline_mode = #tpu.pipeline_mode<synchronous>, transform_indices = @transform_9, window_bounds = array<i64: 8, 16>}, {pipeline_mode = #tpu.pipeline_mode<synchronous>, transform_indices = @transform_10, window_bounds = array<i64: 8, 1>}, {pipeline_mode = #tpu.pipeline_mode<synchronous>, transform_indices = @transform_11, window_bounds = array<i64: 9, 8, 8>}, {pipeline_mode = #tpu.pipeline_mode<synchronous>, transform_indices = @transform_12, window_bounds = array<i64: 24, 1>}, {pipeline_mode = #tpu.pipeline_mode<synchronous>, transform_indices = @transform_13, window_bounds = array<i64: 24, 1>}, {pipeline_mode = #tpu.pipeline_mode<synchronous>, transform_indices = @transform_14, window_bounds = array<i64: 8, 24>}, {pipeline_mode = #tpu.pipeline_mode<synchronous>, transform_indices = @transform_15, window_bounds = array<i64: 8, 1>}, {pipeline_mode = #tpu.pipeline_mode<synchronous>, transform_indices = @transform_16, window_bounds = array<i64: 9, 8, 8>}, {transform_indices = @transform_17, window_bounds = array<i64: 2, 12, 256>}]} {
    %c0 = arith.constant 0 : index
    %c0_0 = arith.constant 0 : index
    %c0_1 = arith.constant 0 : index
    %0 = vector.load %arg1[%c0, %c0_0, %c0_1] : memref<2x4x256xf32, #tpu.memory_space<vmem>>, vector<1x4x256xf32>
    %1 = vector.shape_cast %0 : vector<1x4x256xf32> to vector<4x256xf32>
    %c0_2 = arith.constant 0 : index
    %c0_3 = arith.constant 0 : index
    %2 = vector.load %arg19[%c0_2, %c0_3] : memref<32x512xf32, #tpu.memory_space<vmem>>, vector<4x256xf32>
    tpu.vector_store %arg19[%c0_2, %c0_3], %1 {strides = array<i32>} : memref<32x512xf32, #tpu.memory_space<vmem>>, vector<4x256xf32>,
    %c1 = arith.constant 1 : index
    %c0_4 = arith.constant 0 : index
    %c0_5 = arith.constant 0 : index
    %3 = vector.load %arg1[%c1, %c0_4, %c0_5] : memref<2x4x256xf32, #tpu.memory_space<vmem>>, vector<1x4x256xf32>
    %4 = vector.shape_cast %3 : vector<1x4x256xf32> to vector<4x256xf32>
    %c0_6 = arith.constant 0 : index
    %c256 = arith.constant 256 : index
    %5 = vector.load %arg19[%c0_6, %c256] : memref<32x512xf32, #tpu.memory_space<vmem>>, vector<4x256xf32>
    tpu.vector_store %arg19[%c0_6, %c256], %4 {strides = array<i32>} : memref<32x512xf32, #tpu.memory_space<vmem>>, vector<4x256xf32>,
    %cst = arith.constant 0.000000e+00 : f32
    %6 = vector.broadcast %cst : f32 to vector<4x512xf32>
    %c4 = arith.constant 4 : index
    %c0_7 = arith.constant 0 : index
    %7 = vector.load %arg19[%c4, %c0_7] : memref<32x512xf32, #tpu.memory_space<vmem>>, vector<4x512xf32>
    tpu.vector_store %arg19[%c4, %c0_7], %6 {strides = array<i32>} : memref<32x512xf32, #tpu.memory_space<vmem>>, vector<4x512xf32>,
    %c0_8 = arith.constant 0 : index
    %c0_9 = arith.constant 0 : index
    %8 = vector.load %arg2[%c0_8, %c0_9] : memref<9x512xf32, #tpu.memory_space<vmem>>, vector<1x512xf32>
    %c1_10 = arith.constant 1 : index
    %c0_11 = arith.constant 0 : index
    %9 = vector.load %arg2[%c1_10, %c0_11] : memref<9x512xf32, #tpu.memory_space<vmem>>, vector<1x512xf32>
    %c2 = arith.constant 2 : index
    %c0_12 = arith.constant 0 : index
    %10 = vector.load %arg2[%c2, %c0_12] : memref<9x512xf32, #tpu.memory_space<vmem>>, vector<1x512xf32>
    %c3 = arith.constant 3 : index
    %c0_13 = arith.constant 0 : index
    %11 = vector.load %arg2[%c3, %c0_13] : memref<9x512xf32, #tpu.memory_space<vmem>>, vector<1x512xf32>
    %c5 = arith.constant 5 : index
    %c0_14 = arith.constant 0 : index
    %12 = vector.load %arg2[%c5, %c0_14] : memref<9x512xf32, #tpu.memory_space<vmem>>, vector<1x512xf32>
    %c6 = arith.constant 6 : index
    %c0_15 = arith.constant 0 : index
    %13 = vector.load %arg2[%c6, %c0_15] : memref<9x512xf32, #tpu.memory_space<vmem>>, vector<1x512xf32>
    %c7 = arith.constant 7 : index
    %c0_16 = arith.constant 0 : index
    %14 = vector.load %arg2[%c7, %c0_16] : memref<9x512xf32, #tpu.memory_space<vmem>>, vector<1x512xf32>
    %c8 = arith.constant 8 : index
    %c0_17 = arith.constant 0 : index
    %15 = vector.load %arg2[%c8, %c0_17] : memref<9x512xf32, #tpu.memory_space<vmem>>, vector<1x512xf32>
    %c0_18 = arith.constant 0 : index
    %c0_19 = arith.constant 0 : index
    %16 = vector.load %arg19[%c0_18, %c0_19] : memref<32x512xf32, #tpu.memory_space<vmem>>, vector<8x512xf32>
    %c0_20 = arith.constant 0 : index
    %c0_21 = arith.constant 0 : index
    %17 = vector.load %arg3[%c0_20, %c0_21] : memref<8x1xf32, #tpu.memory_space<vmem>>, vector<8x1xf32>
    %18 = vector.broadcast %17 : vector<8x1xf32> to vector<8x512xf32>
    %19 = arith.mulf %16, %18 : vector<8x512xf32>
    %c0_22 = arith.constant 0 : index
    %c0_23 = arith.constant 0 : index
    %20 = vector.load %arg4[%c0_22, %c0_23] : memref<8x1xf32, #tpu.memory_space<vmem>>, vector<8x1xf32>
    %21 = vector.broadcast %20 : vector<8x1xf32> to vector<8x512xf32>
    %22 = arith.addf %19, %21 : vector<8x512xf32>
    %cst_24 = arith.constant 0.000000e+00 : f32
    %23 = vector.broadcast %cst_24 : f32 to vector<8x512xf32>
    %24 = arith.maximumf %22, %23 : vector<8x512xf32>
    %c0_25 = arith.constant 0 : index
    %c0_26 = arith.constant 0 : index
    %25 = vector.load %arg5[%c0_25, %c0_26] : memref<8x8xbf16, #tpu.memory_space<vmem>>, vector<8x8xbf16>
    %26 = arith.truncf %24 : vector<8x512xf32> to vector<8x512xbf16>
    %cst_27 = arith.constant dense<0.000000e+00> : vector<8x512xf32>
    %27 = tpu.matmul %25, %26, %cst_27 {dimension_numbers = #tpu.dot_dimension_numbers<[1], [0], [0], [1], [0, 0, 1, 1], [], []>} : vector<8x8xbf16>, vector<8x512xbf16>, vector<8x512xf32> -> vector<8x512xf32>
    %cst_28 = arith.constant 0.000000e+00 : f32
    %28 = vector.broadcast %cst_28 : f32 to vector<8x512xf32>
    %29 = arith.maximumf %27, %28 : vector<8x512xf32>
    %c17_i32 = arith.constant 17 : i32
    %30 = tpu.dynamic_rotate %29 by %c17_i32 dim 1 : vector<8x512xf32>, i32 -> vector<8x512xf32>
    %31 = vector.broadcast %8 : vector<1x512xf32> to vector<8x512xf32>
    %32 = arith.mulf %30, %31 : vector<8x512xf32>
    %33 = arith.truncf %32 : vector<8x512xf32> to vector<8x512xbf16>
    %c0_29 = arith.constant 0 : index
    %c0_30 = arith.constant 0 : index
    %c0_31 = arith.constant 0 : index
    %34 = vector.load %arg7[%c0_29, %c0_30, %c0_31] : memref<9x8x8xbf16, #tpu.memory_space<vmem>>, vector<1x8x8xbf16>
    %35 = vector.shape_cast %34 : vector<1x8x8xbf16> to vector<8x8xbf16>
    %cst_32 = arith.constant dense<0.000000e+00> : vector<8x512xf32>
    %36 = tpu.matmul %35, %33, %cst_32 {dimension_numbers = #tpu.dot_dimension_numbers<[1], [0], [0], [1], [0, 0, 1, 1], [], []>} : vector<8x8xbf16>, vector<8x512xbf16>, vector<8x512xf32> -> vector<8x512xf32>
    %c16_i32 = arith.constant 16 : i32
    %37 = tpu.dynamic_rotate %29 by %c16_i32 dim 1 : vector<8x512xf32>, i32 -> vector<8x512xf32>
    %38 = vector.broadcast %9 : vector<1x512xf32> to vector<8x512xf32>
    %39 = arith.mulf %37, %38 : vector<8x512xf32>
    %40 = arith.truncf %39 : vector<8x512xf32> to vector<8x512xbf16>
    %c1_33 = arith.constant 1 : index
    %c0_34 = arith.constant 0 : index
    %c0_35 = arith.constant 0 : index
    %41 = vector.load %arg7[%c1_33, %c0_34, %c0_35] : memref<9x8x8xbf16, #tpu.memory_space<vmem>>, vector<1x8x8xbf16>
    %42 = vector.shape_cast %41 : vector<1x8x8xbf16> to vector<8x8xbf16>
    %cst_36 = arith.constant dense<0.000000e+00> : vector<8x512xf32>
    %43 = tpu.matmul %42, %40, %cst_36 {dimension_numbers = #tpu.dot_dimension_numbers<[1], [0], [0], [1], [0, 0, 1, 1], [], []>} : vector<8x8xbf16>, vector<8x512xbf16>, vector<8x512xf32> -> vector<8x512xf32>
    %44 = arith.addf %36, %43 : vector<8x512xf32>
    %c15_i32 = arith.constant 15 : i32
    %45 = tpu.dynamic_rotate %29 by %c15_i32 dim 1 : vector<8x512xf32>, i32 -> vector<8x512xf32>
    %46 = vector.broadcast %10 : vector<1x512xf32> to vector<8x512xf32>
    %47 = arith.mulf %45, %46 : vector<8x512xf32>
    %48 = arith.truncf %47 : vector<8x512xf32> to vector<8x512xbf16>
    %c2_37 = arith.constant 2 : index
    %c0_38 = arith.constant 0 : index
    %c0_39 = arith.constant 0 : index
    %49 = vector.load %arg7[%c2_37, %c0_38, %c0_39] : memref<9x8x8xbf16, #tpu.memory_space<vmem>>, vector<1x8x8xbf16>
    %50 = vector.shape_cast %49 : vector<1x8x8xbf16> to vector<8x8xbf16>
    %cst_40 = arith.constant dense<0.000000e+00> : vector<8x512xf32>
    %51 = tpu.matmul %50, %48, %cst_40 {dimension_numbers = #tpu.dot_dimension_numbers<[1], [0], [0], [1], [0, 0, 1, 1], [], []>} : vector<8x8xbf16>, vector<8x512xbf16>, vector<8x512xf32> -> vector<8x512xf32>
    %52 = arith.addf %44, %51 : vector<8x512xf32>
    %c1_i32 = arith.constant 1 : i32
    %53 = tpu.dynamic_rotate %29 by %c1_i32 dim 1 : vector<8x512xf32>, i32 -> vector<8x512xf32>
    %54 = vector.broadcast %11 : vector<1x512xf32> to vector<8x512xf32>
    %55 = arith.mulf %53, %54 : vector<8x512xf32>
    %56 = arith.truncf %55 : vector<8x512xf32> to vector<8x512xbf16>
    %c3_41 = arith.constant 3 : index
    %c0_42 = arith.constant 0 : index
    %c0_43 = arith.constant 0 : index
    %57 = vector.load %arg7[%c3_41, %c0_42, %c0_43] : memref<9x8x8xbf16, #tpu.memory_space<vmem>>, vector<1x8x8xbf16>
    %58 = vector.shape_cast %57 : vector<1x8x8xbf16> to vector<8x8xbf16>
    %cst_44 = arith.constant dense<0.000000e+00> : vector<8x512xf32>
    %59 = tpu.matmul %58, %56, %cst_44 {dimension_numbers = #tpu.dot_dimension_numbers<[1], [0], [0], [1], [0, 0, 1, 1], [], []>} : vector<8x8xbf16>, vector<8x512xbf16>, vector<8x512xf32> -> vector<8x512xf32>
    %60 = arith.addf %52, %59 : vector<8x512xf32>
    %61 = arith.truncf %29 : vector<8x512xf32> to vector<8x512xbf16>
    %c4_45 = arith.constant 4 : index
    %c0_46 = arith.constant 0 : index
    %c0_47 = arith.constant 0 : index
    %62 = vector.load %arg7[%c4_45, %c0_46, %c0_47] : memref<9x8x8xbf16, #tpu.memory_space<vmem>>, vector<1x8x8xbf16>
    %63 = vector.shape_cast %62 : vector<1x8x8xbf16> to vector<8x8xbf16>
    %cst_48 = arith.constant dense<0.000000e+00> : vector<8x512xf32>
    %64 = tpu.matmul %63, %61, %cst_48 {dimension_numbers = #tpu.dot_dimension_numbers<[1], [0], [0], [1], [0, 0, 1, 1], [], []>} : vector<8x8xbf16>, vector<8x512xbf16>, vector<8x512xf32> -> vector<8x512xf32>
    %65 = arith.addf %60, %64 : vector<8x512xf32>
    %c511_i32 = arith.constant 511 : i32
    %66 = tpu.dynamic_rotate %29 by %c511_i32 dim 1 : vector<8x512xf32>, i32 -> vector<8x512xf32>
    %67 = vector.broadcast %12 : vector<1x512xf32> to vector<8x512xf32>
    %68 = arith.mulf %66, %67 : vector<8x512xf32>
    %69 = arith.truncf %68 : vector<8x512xf32> to vector<8x512xbf16>
    %c5_49 = arith.constant 5 : index
    %c0_50 = arith.constant 0 : index
    %c0_51 = arith.constant 0 : index
    %70 = vector.load %arg7[%c5_49, %c0_50, %c0_51] : memref<9x8x8xbf16, #tpu.memory_space<vmem>>, vector<1x8x8xbf16>
    %71 = vector.shape_cast %70 : vector<1x8x8xbf16> to vector<8x8xbf16>
    %cst_52 = arith.constant dense<0.000000e+00> : vector<8x512xf32>
    %72 = tpu.matmul %71, %69, %cst_52 {dimension_numbers = #tpu.dot_dimension_numbers<[1], [0], [0], [1], [0, 0, 1, 1], [], []>} : vector<8x8xbf16>, vector<8x512xbf16>, vector<8x512xf32> -> vector<8x512xf32>
    %73 = arith.addf %65, %72 : vector<8x512xf32>
    %c497_i32 = arith.constant 497 : i32
    %74 = tpu.dynamic_rotate %29 by %c497_i32 dim 1 : vector<8x512xf32>, i32 -> vector<8x512xf32>
    %75 = vector.broadcast %13 : vector<1x512xf32> to vector<8x512xf32>
    %76 = arith.mulf %74, %75 : vector<8x512xf32>
    %77 = arith.truncf %76 : vector<8x512xf32> to vector<8x512xbf16>
    %c6_53 = arith.constant 6 : index
    %c0_54 = arith.constant 0 : index
    %c0_55 = arith.constant 0 : index
    %78 = vector.load %arg7[%c6_53, %c0_54, %c0_55] : memref<9x8x8xbf16, #tpu.memory_space<vmem>>, vector<1x8x8xbf16>
    %79 = vector.shape_cast %78 : vector<1x8x8xbf16> to vector<8x8xbf16>
    %cst_56 = arith.constant dense<0.000000e+00> : vector<8x512xf32>
    %80 = tpu.matmul %79, %77, %cst_56 {dimension_numbers = #tpu.dot_dimension_numbers<[1], [0], [0], [1], [0, 0, 1, 1], [], []>} : vector<8x8xbf16>, vector<8x512xbf16>, vector<8x512xf32> -> vector<8x512xf32>
    %81 = arith.addf %73, %80 : vector<8x512xf32>
    %c496_i32 = arith.constant 496 : i32
    %82 = tpu.dynamic_rotate %29 by %c496_i32 dim 1 : vector<8x512xf32>, i32 -> vector<8x512xf32>
    %83 = vector.broadcast %14 : vector<1x512xf32> to vector<8x512xf32>
    %84 = arith.mulf %82, %83 : vector<8x512xf32>
    %85 = arith.truncf %84 : vector<8x512xf32> to vector<8x512xbf16>
    %c7_57 = arith.constant 7 : index
    %c0_58 = arith.constant 0 : index
    %c0_59 = arith.constant 0 : index
    %86 = vector.load %arg7[%c7_57, %c0_58, %c0_59] : memref<9x8x8xbf16, #tpu.memory_space<vmem>>, vector<1x8x8xbf16>
    %87 = vector.shape_cast %86 : vector<1x8x8xbf16> to vector<8x8xbf16>
    %cst_60 = arith.constant dense<0.000000e+00> : vector<8x512xf32>
    %88 = tpu.matmul %87, %85, %cst_60 {dimension_numbers = #tpu.dot_dimension_numbers<[1], [0], [0], [1], [0, 0, 1, 1], [], []>} : vector<8x8xbf16>, vector<8x512xbf16>, vector<8x512xf32> -> vector<8x512xf32>
    %89 = arith.addf %81, %88 : vector<8x512xf32>
    %c495_i32 = arith.constant 495 : i32
    %90 = tpu.dynamic_rotate %29 by %c495_i32 dim 1 : vector<8x512xf32>, i32 -> vector<8x512xf32>
    %91 = vector.broadcast %15 : vector<1x512xf32> to vector<8x512xf32>
    %92 = arith.mulf %90, %91 : vector<8x512xf32>
    %93 = arith.truncf %92 : vector<8x512xf32> to vector<8x512xbf16>
    %c8_61 = arith.constant 8 : index
    %c0_62 = arith.constant 0 : index
    %c0_63 = arith.constant 0 : index
    %94 = vector.load %arg7[%c8_61, %c0_62, %c0_63] : memref<9x8x8xbf16, #tpu.memory_space<vmem>>, vector<1x8x8xbf16>
    %95 = vector.shape_cast %94 : vector<1x8x8xbf16> to vector<8x8xbf16>
    %cst_64 = arith.constant dense<0.000000e+00> : vector<8x512xf32>
    %96 = tpu.matmul %95, %93, %cst_64 {dimension_numbers = #tpu.dot_dimension_numbers<[1], [0], [0], [1], [0, 0, 1, 1], [], []>} : vector<8x8xbf16>, vector<8x512xbf16>, vector<8x512xf32> -> vector<8x512xf32>
    %97 = arith.addf %89, %96 : vector<8x512xf32>
    %c8_65 = arith.constant 8 : index
    %c0_66 = arith.constant 0 : index
    %98 = vector.load %arg19[%c8_65, %c0_66] : memref<32x512xf32, #tpu.memory_space<vmem>>, vector<8x512xf32>
    tpu.vector_store %arg19[%c8_65, %c0_66], %97 {strides = array<i32>} : memref<32x512xf32, #tpu.memory_space<vmem>>, vector<8x512xf32>,
    %c0_67 = arith.constant 0 : index
    %c0_68 = arith.constant 0 : index
    %99 = vector.load %arg19[%c0_67, %c0_68] : memref<32x512xf32, #tpu.memory_space<vmem>>, vector<16x512xf32>
    %c0_69 = arith.constant 0 : index
    %c0_70 = arith.constant 0 : index
    %100 = vector.load %arg8[%c0_69, %c0_70] : memref<16x1xf32, #tpu.memory_space<vmem>>, vector<16x1xf32>
    %101 = vector.broadcast %100 : vector<16x1xf32> to vector<16x512xf32>
    %102 = arith.mulf %99, %101 : vector<16x512xf32>
    %c0_71 = arith.constant 0 : index
    %c0_72 = arith.constant 0 : index
    %103 = vector.load %arg9[%c0_71, %c0_72] : memref<16x1xf32, #tpu.memory_space<vmem>>, vector<16x1xf32>
    %104 = vector.broadcast %103 : vector<16x1xf32> to vector<16x512xf32>
    %105 = arith.addf %102, %104 : vector<16x512xf32>
    %cst_73 = arith.constant 0.000000e+00 : f32
    %106 = vector.broadcast %cst_73 : f32 to vector<16x512xf32>
    %107 = arith.maximumf %105, %106 : vector<16x512xf32>
    %c0_74 = arith.constant 0 : index
    %c0_75 = arith.constant 0 : index
    %108 = vector.load %arg10[%c0_74, %c0_75] : memref<8x16xbf16, #tpu.memory_space<vmem>>, vector<8x16xbf16>
    %109 = arith.truncf %107 : vector<16x512xf32> to vector<16x512xbf16>
    %cst_76 = arith.constant dense<0.000000e+00> : vector<8x512xf32>
    %110 = tpu.matmul %108, %109, %cst_76 {dimension_numbers = #tpu.dot_dimension_numbers<[1], [0], [0], [1], [0, 0, 1, 1], [], []>} : vector<8x16xbf16>, vector<16x512xbf16>, vector<8x512xf32> -> vector<8x512xf32>
    %cst_77 = arith.constant 0.000000e+00 : f32
    %111 = vector.broadcast %cst_77 : f32 to vector<8x512xf32>
    %112 = arith.maximumf %110, %111 : vector<8x512xf32>
    %c17_i32_78 = arith.constant 17 : i32
    %113 = tpu.dynamic_rotate %112 by %c17_i32_78 dim 1 : vector<8x512xf32>, i32 -> vector<8x512xf32>
    %114 = vector.broadcast %8 : vector<1x512xf32> to vector<8x512xf32>
    %115 = arith.mulf %113, %114 : vector<8x512xf32>
    %116 = arith.truncf %115 : vector<8x512xf32> to vector<8x512xbf16>
    %c0_79 = arith.constant 0 : index
    %c0_80 = arith.constant 0 : index
    %c0_81 = arith.constant 0 : index
    %117 = vector.load %arg12[%c0_79, %c0_80, %c0_81] : memref<9x8x8xbf16, #tpu.memory_space<vmem>>, vector<1x8x8xbf16>
    %118 = vector.shape_cast %117 : vector<1x8x8xbf16> to vector<8x8xbf16>
    %cst_82 = arith.constant dense<0.000000e+00> : vector<8x512xf32>
    %119 = tpu.matmul %118, %116, %cst_82 {dimension_numbers = #tpu.dot_dimension_numbers<[1], [0], [0], [1], [0, 0, 1, 1], [], []>} : vector<8x8xbf16>, vector<8x512xbf16>, vector<8x512xf32> -> vector<8x512xf32>
    %c16_i32_83 = arith.constant 16 : i32
    %120 = tpu.dynamic_rotate %112 by %c16_i32_83 dim 1 : vector<8x512xf32>, i32 -> vector<8x512xf32>
    %121 = vector.broadcast %9 : vector<1x512xf32> to vector<8x512xf32>
    %122 = arith.mulf %120, %121 : vector<8x512xf32>
    %123 = arith.truncf %122 : vector<8x512xf32> to vector<8x512xbf16>
    %c1_84 = arith.constant 1 : index
    %c0_85 = arith.constant 0 : index
    %c0_86 = arith.constant 0 : index
    %124 = vector.load %arg12[%c1_84, %c0_85, %c0_86] : memref<9x8x8xbf16, #tpu.memory_space<vmem>>, vector<1x8x8xbf16>
    %125 = vector.shape_cast %124 : vector<1x8x8xbf16> to vector<8x8xbf16>
    %cst_87 = arith.constant dense<0.000000e+00> : vector<8x512xf32>
    %126 = tpu.matmul %125, %123, %cst_87 {dimension_numbers = #tpu.dot_dimension_numbers<[1], [0], [0], [1], [0, 0, 1, 1], [], []>} : vector<8x8xbf16>, vector<8x512xbf16>, vector<8x512xf32> -> vector<8x512xf32>
    %127 = arith.addf %119, %126 : vector<8x512xf32>
    %c15_i32_88 = arith.constant 15 : i32
    %128 = tpu.dynamic_rotate %112 by %c15_i32_88 dim 1 : vector<8x512xf32>, i32 -> vector<8x512xf32>
    %129 = vector.broadcast %10 : vector<1x512xf32> to vector<8x512xf32>
    %130 = arith.mulf %128, %129 : vector<8x512xf32>
    %131 = arith.truncf %130 : vector<8x512xf32> to vector<8x512xbf16>
    %c2_89 = arith.constant 2 : index
    %c0_90 = arith.constant 0 : index
    %c0_91 = arith.constant 0 : index
    %132 = vector.load %arg12[%c2_89, %c0_90, %c0_91] : memref<9x8x8xbf16, #tpu.memory_space<vmem>>, vector<1x8x8xbf16>
    %133 = vector.shape_cast %132 : vector<1x8x8xbf16> to vector<8x8xbf16>
    %cst_92 = arith.constant dense<0.000000e+00> : vector<8x512xf32>
    %134 = tpu.matmul %133, %131, %cst_92 {dimension_numbers = #tpu.dot_dimension_numbers<[1], [0], [0], [1], [0, 0, 1, 1], [], []>} : vector<8x8xbf16>, vector<8x512xbf16>, vector<8x512xf32> -> vector<8x512xf32>
    %135 = arith.addf %127, %134 : vector<8x512xf32>
    %c1_i32_93 = arith.constant 1 : i32
    %136 = tpu.dynamic_rotate %112 by %c1_i32_93 dim 1 : vector<8x512xf32>, i32 -> vector<8x512xf32>
    %137 = vector.broadcast %11 : vector<1x512xf32> to vector<8x512xf32>
    %138 = arith.mulf %136, %137 : vector<8x512xf32>
    %139 = arith.truncf %138 : vector<8x512xf32> to vector<8x512xbf16>
    %c3_94 = arith.constant 3 : index
    %c0_95 = arith.constant 0 : index
    %c0_96 = arith.constant 0 : index
    %140 = vector.load %arg12[%c3_94, %c0_95, %c0_96] : memref<9x8x8xbf16, #tpu.memory_space<vmem>>, vector<1x8x8xbf16>
    %141 = vector.shape_cast %140 : vector<1x8x8xbf16> to vector<8x8xbf16>
    %cst_97 = arith.constant dense<0.000000e+00> : vector<8x512xf32>
    %142 = tpu.matmul %141, %139, %cst_97 {dimension_numbers = #tpu.dot_dimension_numbers<[1], [0], [0], [1], [0, 0, 1, 1], [], []>} : vector<8x8xbf16>, vector<8x512xbf16>, vector<8x512xf32> -> vector<8x512xf32>
    %143 = arith.addf %135, %142 : vector<8x512xf32>
    %144 = arith.truncf %112 : vector<8x512xf32> to vector<8x512xbf16>
    %c4_98 = arith.constant 4 : index
    %c0_99 = arith.constant 0 : index
    %c0_100 = arith.constant 0 : index
    %145 = vector.load %arg12[%c4_98, %c0_99, %c0_100] : memref<9x8x8xbf16, #tpu.memory_space<vmem>>, vector<1x8x8xbf16>
    %146 = vector.shape_cast %145 : vector<1x8x8xbf16> to vector<8x8xbf16>
    %cst_101 = arith.constant dense<0.000000e+00> : vector<8x512xf32>
    %147 = tpu.matmul %146, %144, %cst_101 {dimension_numbers = #tpu.dot_dimension_numbers<[1], [0], [0], [1], [0, 0, 1, 1], [], []>} : vector<8x8xbf16>, vector<8x512xbf16>, vector<8x512xf32> -> vector<8x512xf32>
    %148 = arith.addf %143, %147 : vector<8x512xf32>
    %c511_i32_102 = arith.constant 511 : i32
    %149 = tpu.dynamic_rotate %112 by %c511_i32_102 dim 1 : vector<8x512xf32>, i32 -> vector<8x512xf32>
    %150 = vector.broadcast %12 : vector<1x512xf32> to vector<8x512xf32>
    %151 = arith.mulf %149, %150 : vector<8x512xf32>
    %152 = arith.truncf %151 : vector<8x512xf32> to vector<8x512xbf16>
    %c5_103 = arith.constant 5 : index
    %c0_104 = arith.constant 0 : index
    %c0_105 = arith.constant 0 : index
    %153 = vector.load %arg12[%c5_103, %c0_104, %c0_105] : memref<9x8x8xbf16, #tpu.memory_space<vmem>>, vector<1x8x8xbf16>
    %154 = vector.shape_cast %153 : vector<1x8x8xbf16> to vector<8x8xbf16>
    %cst_106 = arith.constant dense<0.000000e+00> : vector<8x512xf32>
    %155 = tpu.matmul %154, %152, %cst_106 {dimension_numbers = #tpu.dot_dimension_numbers<[1], [0], [0], [1], [0, 0, 1, 1], [], []>} : vector<8x8xbf16>, vector<8x512xbf16>, vector<8x512xf32> -> vector<8x512xf32>
    %156 = arith.addf %148, %155 : vector<8x512xf32>
    %c497_i32_107 = arith.constant 497 : i32
    %157 = tpu.dynamic_rotate %112 by %c497_i32_107 dim 1 : vector<8x512xf32>, i32 -> vector<8x512xf32>
    %158 = vector.broadcast %13 : vector<1x512xf32> to vector<8x512xf32>
    %159 = arith.mulf %157, %158 : vector<8x512xf32>
    %160 = arith.truncf %159 : vector<8x512xf32> to vector<8x512xbf16>
    %c6_108 = arith.constant 6 : index
    %c0_109 = arith.constant 0 : index
    %c0_110 = arith.constant 0 : index
    %161 = vector.load %arg12[%c6_108, %c0_109, %c0_110] : memref<9x8x8xbf16, #tpu.memory_space<vmem>>, vector<1x8x8xbf16>
    %162 = vector.shape_cast %161 : vector<1x8x8xbf16> to vector<8x8xbf16>
    %cst_111 = arith.constant dense<0.000000e+00> : vector<8x512xf32>
    %163 = tpu.matmul %162, %160, %cst_111 {dimension_numbers = #tpu.dot_dimension_numbers<[1], [0], [0], [1], [0, 0, 1, 1], [], []>} : vector<8x8xbf16>, vector<8x512xbf16>, vector<8x512xf32> -> vector<8x512xf32>
    %164 = arith.addf %156, %163 : vector<8x512xf32>
    %c496_i32_112 = arith.constant 496 : i32
    %165 = tpu.dynamic_rotate %112 by %c496_i32_112 dim 1 : vector<8x512xf32>, i32 -> vector<8x512xf32>
    %166 = vector.broadcast %14 : vector<1x512xf32> to vector<8x512xf32>
    %167 = arith.mulf %165, %166 : vector<8x512xf32>
    %168 = arith.truncf %167 : vector<8x512xf32> to vector<8x512xbf16>
    %c7_113 = arith.constant 7 : index
    %c0_114 = arith.constant 0 : index
    %c0_115 = arith.constant 0 : index
    %169 = vector.load %arg12[%c7_113, %c0_114, %c0_115] : memref<9x8x8xbf16, #tpu.memory_space<vmem>>, vector<1x8x8xbf16>
    %170 = vector.shape_cast %169 : vector<1x8x8xbf16> to vector<8x8xbf16>
    %cst_116 = arith.constant dense<0.000000e+00> : vector<8x512xf32>
    %171 = tpu.matmul %170, %168, %cst_116 {dimension_numbers = #tpu.dot_dimension_numbers<[1], [0], [0], [1], [0, 0, 1, 1], [], []>} : vector<8x8xbf16>, vector<8x512xbf16>, vector<8x512xf32> -> vector<8x512xf32>
    %172 = arith.addf %164, %171 : vector<8x512xf32>
    %c495_i32_117 = arith.constant 495 : i32
    %173 = tpu.dynamic_rotate %112 by %c495_i32_117 dim 1 : vector<8x512xf32>, i32 -> vector<8x512xf32>
    %174 = vector.broadcast %15 : vector<1x512xf32> to vector<8x512xf32>
    %175 = arith.mulf %173, %174 : vector<8x512xf32>
    %176 = arith.truncf %175 : vector<8x512xf32> to vector<8x512xbf16>
    %c8_118 = arith.constant 8 : index
    %c0_119 = arith.constant 0 : index
    %c0_120 = arith.constant 0 : index
    %177 = vector.load %arg12[%c8_118, %c0_119, %c0_120] : memref<9x8x8xbf16, #tpu.memory_space<vmem>>, vector<1x8x8xbf16>
    %178 = vector.shape_cast %177 : vector<1x8x8xbf16> to vector<8x8xbf16>
    %cst_121 = arith.constant dense<0.000000e+00> : vector<8x512xf32>
    %179 = tpu.matmul %178, %176, %cst_121 {dimension_numbers = #tpu.dot_dimension_numbers<[1], [0], [0], [1], [0, 0, 1, 1], [], []>} : vector<8x8xbf16>, vector<8x512xbf16>, vector<8x512xf32> -> vector<8x512xf32>
    %180 = arith.addf %172, %179 : vector<8x512xf32>
    %c16 = arith.constant 16 : index
    %c0_122 = arith.constant 0 : index
    %181 = vector.load %arg19[%c16, %c0_122] : memref<32x512xf32, #tpu.memory_space<vmem>>, vector<8x512xf32>
    tpu.vector_store %arg19[%c16, %c0_122], %180 {strides = array<i32>} : memref<32x512xf32, #tpu.memory_space<vmem>>, vector<8x512xf32>,
    %c0_123 = arith.constant 0 : index
    %c0_124 = arith.constant 0 : index
    %182 = vector.load %arg19[%c0_123, %c0_124] : memref<32x512xf32, #tpu.memory_space<vmem>>, vector<24x512xf32>
    %c0_125 = arith.constant 0 : index
    %c0_126 = arith.constant 0 : index
    %183 = vector.load %arg13[%c0_125, %c0_126] : memref<24x1xf32, #tpu.memory_space<vmem>>, vector<24x1xf32>
    %184 = vector.broadcast %183 : vector<24x1xf32> to vector<24x512xf32>
    %185 = arith.mulf %182, %184 : vector<24x512xf32>
    %c0_127 = arith.constant 0 : index
    %c0_128 = arith.constant 0 : index
    %186 = vector.load %arg14[%c0_127, %c0_128] : memref<24x1xf32, #tpu.memory_space<vmem>>, vector<24x1xf32>
    %187 = vector.broadcast %186 : vector<24x1xf32> to vector<24x512xf32>
    %188 = arith.addf %185, %187 : vector<24x512xf32>
    %cst_129 = arith.constant 0.000000e+00 : f32
    %189 = vector.broadcast %cst_129 : f32 to vector<24x512xf32>
    %190 = arith.maximumf %188, %189 : vector<24x512xf32>
    %c0_130 = arith.constant 0 : index
    %c0_131 = arith.constant 0 : index
    %191 = vector.load %arg15[%c0_130, %c0_131] : memref<8x24xbf16, #tpu.memory_space<vmem>>, vector<8x24xbf16>
    %192 = arith.truncf %190 : vector<24x512xf32> to vector<24x512xbf16>
    %cst_132 = arith.constant dense<0.000000e+00> : vector<8x512xf32>
    %193 = tpu.matmul %191, %192, %cst_132 {dimension_numbers = #tpu.dot_dimension_numbers<[1], [0], [0], [1], [0, 0, 1, 1], [], []>} : vector<8x24xbf16>, vector<24x512xbf16>, vector<8x512xf32> -> vector<8x512xf32>
    %cst_133 = arith.constant 0.000000e+00 : f32
    %194 = vector.broadcast %cst_133 : f32 to vector<8x512xf32>
    %195 = arith.maximumf %193, %194 : vector<8x512xf32>
    %c17_i32_134 = arith.constant 17 : i32
    %196 = tpu.dynamic_rotate %195 by %c17_i32_134 dim 1 : vector<8x512xf32>, i32 -> vector<8x512xf32>
    %197 = vector.broadcast %8 : vector<1x512xf32> to vector<8x512xf32>
    %198 = arith.mulf %196, %197 : vector<8x512xf32>
    %199 = arith.truncf %198 : vector<8x512xf32> to vector<8x512xbf16>
    %c0_135 = arith.constant 0 : index
    %c0_136 = arith.constant 0 : index
    %c0_137 = arith.constant 0 : index
    %200 = vector.load %arg17[%c0_135, %c0_136, %c0_137] : memref<9x8x8xbf16, #tpu.memory_space<vmem>>, vector<1x8x8xbf16>
    %201 = vector.shape_cast %200 : vector<1x8x8xbf16> to vector<8x8xbf16>
    %cst_138 = arith.constant dense<0.000000e+00> : vector<8x512xf32>
    %202 = tpu.matmul %201, %199, %cst_138 {dimension_numbers = #tpu.dot_dimension_numbers<[1], [0], [0], [1], [0, 0, 1, 1], [], []>} : vector<8x8xbf16>, vector<8x512xbf16>, vector<8x512xf32> -> vector<8x512xf32>
    %c16_i32_139 = arith.constant 16 : i32
    %203 = tpu.dynamic_rotate %195 by %c16_i32_139 dim 1 : vector<8x512xf32>, i32 -> vector<8x512xf32>
    %204 = vector.broadcast %9 : vector<1x512xf32> to vector<8x512xf32>
    %205 = arith.mulf %203, %204 : vector<8x512xf32>
    %206 = arith.truncf %205 : vector<8x512xf32> to vector<8x512xbf16>
    %c1_140 = arith.constant 1 : index
    %c0_141 = arith.constant 0 : index
    %c0_142 = arith.constant 0 : index
    %207 = vector.load %arg17[%c1_140, %c0_141, %c0_142] : memref<9x8x8xbf16, #tpu.memory_space<vmem>>, vector<1x8x8xbf16>
    %208 = vector.shape_cast %207 : vector<1x8x8xbf16> to vector<8x8xbf16>
    %cst_143 = arith.constant dense<0.000000e+00> : vector<8x512xf32>
    %209 = tpu.matmul %208, %206, %cst_143 {dimension_numbers = #tpu.dot_dimension_numbers<[1], [0], [0], [1], [0, 0, 1, 1], [], []>} : vector<8x8xbf16>, vector<8x512xbf16>, vector<8x512xf32> -> vector<8x512xf32>
    %210 = arith.addf %202, %209 : vector<8x512xf32>
    %c15_i32_144 = arith.constant 15 : i32
    %211 = tpu.dynamic_rotate %195 by %c15_i32_144 dim 1 : vector<8x512xf32>, i32 -> vector<8x512xf32>
    %212 = vector.broadcast %10 : vector<1x512xf32> to vector<8x512xf32>
    %213 = arith.mulf %211, %212 : vector<8x512xf32>
    %214 = arith.truncf %213 : vector<8x512xf32> to vector<8x512xbf16>
    %c2_145 = arith.constant 2 : index
    %c0_146 = arith.constant 0 : index
    %c0_147 = arith.constant 0 : index
    %215 = vector.load %arg17[%c2_145, %c0_146, %c0_147] : memref<9x8x8xbf16, #tpu.memory_space<vmem>>, vector<1x8x8xbf16>
    %216 = vector.shape_cast %215 : vector<1x8x8xbf16> to vector<8x8xbf16>
    %cst_148 = arith.constant dense<0.000000e+00> : vector<8x512xf32>
    %217 = tpu.matmul %216, %214, %cst_148 {dimension_numbers = #tpu.dot_dimension_numbers<[1], [0], [0], [1], [0, 0, 1, 1], [], []>} : vector<8x8xbf16>, vector<8x512xbf16>, vector<8x512xf32> -> vector<8x512xf32>
    %218 = arith.addf %210, %217 : vector<8x512xf32>
    %c1_i32_149 = arith.constant 1 : i32
    %219 = tpu.dynamic_rotate %195 by %c1_i32_149 dim 1 : vector<8x512xf32>, i32 -> vector<8x512xf32>
    %220 = vector.broadcast %11 : vector<1x512xf32> to vector<8x512xf32>
    %221 = arith.mulf %219, %220 : vector<8x512xf32>
    %222 = arith.truncf %221 : vector<8x512xf32> to vector<8x512xbf16>
    %c3_150 = arith.constant 3 : index
    %c0_151 = arith.constant 0 : index
    %c0_152 = arith.constant 0 : index
    %223 = vector.load %arg17[%c3_150, %c0_151, %c0_152] : memref<9x8x8xbf16, #tpu.memory_space<vmem>>, vector<1x8x8xbf16>
    %224 = vector.shape_cast %223 : vector<1x8x8xbf16> to vector<8x8xbf16>
    %cst_153 = arith.constant dense<0.000000e+00> : vector<8x512xf32>
    %225 = tpu.matmul %224, %222, %cst_153 {dimension_numbers = #tpu.dot_dimension_numbers<[1], [0], [0], [1], [0, 0, 1, 1], [], []>} : vector<8x8xbf16>, vector<8x512xbf16>, vector<8x512xf32> -> vector<8x512xf32>
    %226 = arith.addf %218, %225 : vector<8x512xf32>
    %227 = arith.truncf %195 : vector<8x512xf32> to vector<8x512xbf16>
    %c4_154 = arith.constant 4 : index
    %c0_155 = arith.constant 0 : index
    %c0_156 = arith.constant 0 : index
    %228 = vector.load %arg17[%c4_154, %c0_155, %c0_156] : memref<9x8x8xbf16, #tpu.memory_space<vmem>>, vector<1x8x8xbf16>
    %229 = vector.shape_cast %228 : vector<1x8x8xbf16> to vector<8x8xbf16>
    %cst_157 = arith.constant dense<0.000000e+00> : vector<8x512xf32>
    %230 = tpu.matmul %229, %227, %cst_157 {dimension_numbers = #tpu.dot_dimension_numbers<[1], [0], [0], [1], [0, 0, 1, 1], [], []>} : vector<8x8xbf16>, vector<8x512xbf16>, vector<8x512xf32> -> vector<8x512xf32>
    %231 = arith.addf %226, %230 : vector<8x512xf32>
    %c511_i32_158 = arith.constant 511 : i32
    %232 = tpu.dynamic_rotate %195 by %c511_i32_158 dim 1 : vector<8x512xf32>, i32 -> vector<8x512xf32>
    %233 = vector.broadcast %12 : vector<1x512xf32> to vector<8x512xf32>
    %234 = arith.mulf %232, %233 : vector<8x512xf32>
    %235 = arith.truncf %234 : vector<8x512xf32> to vector<8x512xbf16>
    %c5_159 = arith.constant 5 : index
    %c0_160 = arith.constant 0 : index
    %c0_161 = arith.constant 0 : index
    %236 = vector.load %arg17[%c5_159, %c0_160, %c0_161] : memref<9x8x8xbf16, #tpu.memory_space<vmem>>, vector<1x8x8xbf16>
    %237 = vector.shape_cast %236 : vector<1x8x8xbf16> to vector<8x8xbf16>
    %cst_162 = arith.constant dense<0.000000e+00> : vector<8x512xf32>
    %238 = tpu.matmul %237, %235, %cst_162 {dimension_numbers = #tpu.dot_dimension_numbers<[1], [0], [0], [1], [0, 0, 1, 1], [], []>} : vector<8x8xbf16>, vector<8x512xbf16>, vector<8x512xf32> -> vector<8x512xf32>
    %239 = arith.addf %231, %238 : vector<8x512xf32>
    %c497_i32_163 = arith.constant 497 : i32
    %240 = tpu.dynamic_rotate %195 by %c497_i32_163 dim 1 : vector<8x512xf32>, i32 -> vector<8x512xf32>
    %241 = vector.broadcast %13 : vector<1x512xf32> to vector<8x512xf32>
    %242 = arith.mulf %240, %241 : vector<8x512xf32>
    %243 = arith.truncf %242 : vector<8x512xf32> to vector<8x512xbf16>
    %c6_164 = arith.constant 6 : index
    %c0_165 = arith.constant 0 : index
    %c0_166 = arith.constant 0 : index
    %244 = vector.load %arg17[%c6_164, %c0_165, %c0_166] : memref<9x8x8xbf16, #tpu.memory_space<vmem>>, vector<1x8x8xbf16>
    %245 = vector.shape_cast %244 : vector<1x8x8xbf16> to vector<8x8xbf16>
    %cst_167 = arith.constant dense<0.000000e+00> : vector<8x512xf32>
    %246 = tpu.matmul %245, %243, %cst_167 {dimension_numbers = #tpu.dot_dimension_numbers<[1], [0], [0], [1], [0, 0, 1, 1], [], []>} : vector<8x8xbf16>, vector<8x512xbf16>, vector<8x512xf32> -> vector<8x512xf32>
    %247 = arith.addf %239, %246 : vector<8x512xf32>
    %c496_i32_168 = arith.constant 496 : i32
    %248 = tpu.dynamic_rotate %195 by %c496_i32_168 dim 1 : vector<8x512xf32>, i32 -> vector<8x512xf32>
    %249 = vector.broadcast %14 : vector<1x512xf32> to vector<8x512xf32>
    %250 = arith.mulf %248, %249 : vector<8x512xf32>
    %251 = arith.truncf %250 : vector<8x512xf32> to vector<8x512xbf16>
    %c7_169 = arith.constant 7 : index
    %c0_170 = arith.constant 0 : index
    %c0_171 = arith.constant 0 : index
    %252 = vector.load %arg17[%c7_169, %c0_170, %c0_171] : memref<9x8x8xbf16, #tpu.memory_space<vmem>>, vector<1x8x8xbf16>
    %253 = vector.shape_cast %252 : vector<1x8x8xbf16> to vector<8x8xbf16>
    %cst_172 = arith.constant dense<0.000000e+00> : vector<8x512xf32>
    %254 = tpu.matmul %253, %251, %cst_172 {dimension_numbers = #tpu.dot_dimension_numbers<[1], [0], [0], [1], [0, 0, 1, 1], [], []>} : vector<8x8xbf16>, vector<8x512xbf16>, vector<8x512xf32> -> vector<8x512xf32>
    %255 = arith.addf %247, %254 : vector<8x512xf32>
    %c495_i32_173 = arith.constant 495 : i32
    %256 = tpu.dynamic_rotate %195 by %c495_i32_173 dim 1 : vector<8x512xf32>, i32 -> vector<8x512xf32>
    %257 = vector.broadcast %15 : vector<1x512xf32> to vector<8x512xf32>
    %258 = arith.mulf %256, %257 : vector<8x512xf32>
    %259 = arith.truncf %258 : vector<8x512xf32> to vector<8x512xbf16>
    %c8_174 = arith.constant 8 : index
    %c0_175 = arith.constant 0 : index
    %c0_176 = arith.constant 0 : index
    %260 = vector.load %arg17[%c8_174, %c0_175, %c0_176] : memref<9x8x8xbf16, #tpu.memory_space<vmem>>, vector<1x8x8xbf16>
    %261 = vector.shape_cast %260 : vector<1x8x8xbf16> to vector<8x8xbf16>
    %cst_177 = arith.constant dense<0.000000e+00> : vector<8x512xf32>
    %262 = tpu.matmul %261, %259, %cst_177 {dimension_numbers = #tpu.dot_dimension_numbers<[1], [0], [0], [1], [0, 0, 1, 1], [], []>} : vector<8x8xbf16>, vector<8x512xbf16>, vector<8x512xf32> -> vector<8x512xf32>
    %263 = arith.addf %255, %262 : vector<8x512xf32>
    %c24 = arith.constant 24 : index
    %c0_178 = arith.constant 0 : index
    %264 = vector.load %arg19[%c24, %c0_178] : memref<32x512xf32, #tpu.memory_space<vmem>>, vector<8x512xf32>
    tpu.vector_store %arg19[%c24, %c0_178], %263 {strides = array<i32>} : memref<32x512xf32, #tpu.memory_space<vmem>>, vector<8x512xf32>,
    %c0_179 = arith.constant 0 : index
    %c0_180 = arith.constant 0 : index
    %265 = vector.load %arg19[%c0_179, %c0_180] : memref<32x512xf32, #tpu.memory_space<vmem>>, vector<4x256xf32>
    %c0_181 = arith.constant 0 : index
    %c0_182 = arith.constant 0 : index
    %c0_183 = arith.constant 0 : index
    %266 = vector.load %arg18[%c0_181, %c0_182, %c0_183] : memref<2x12x256xf32, #tpu.memory_space<vmem>>, vector<1x4x256xf32>
    %267 = vector.shape_cast %266 : vector<1x4x256xf32> to vector<4x256xf32>
    %268 = vector.shape_cast %265 : vector<4x256xf32> to vector<1x4x256xf32>
    tpu.vector_store %arg18[%c0_181, %c0_182, %c0_183], %268 {strides = array<i32>} : memref<2x12x256xf32, #tpu.memory_space<vmem>>, vector<1x4x256xf32>,
    %c16_184 = arith.constant 16 : index
    %c0_185 = arith.constant 0 : index
    %269 = vector.load %arg19[%c16_184, %c0_185] : memref<32x512xf32, #tpu.memory_space<vmem>>, vector<4x256xf32>
    %c0_186 = arith.constant 0 : index
    %c4_187 = arith.constant 4 : index
    %c0_188 = arith.constant 0 : index
    %270 = vector.load %arg18[%c0_186, %c4_187, %c0_188] : memref<2x12x256xf32, #tpu.memory_space<vmem>>, vector<1x4x256xf32>
    %271 = vector.shape_cast %270 : vector<1x4x256xf32> to vector<4x256xf32>
    %272 = vector.shape_cast %269 : vector<4x256xf32> to vector<1x4x256xf32>
    tpu.vector_store %arg18[%c0_186, %c4_187, %c0_188], %272 {strides = array<i32>} : memref<2x12x256xf32, #tpu.memory_space<vmem>>, vector<1x4x256xf32>,
    %c24_189 = arith.constant 24 : index
    %c0_190 = arith.constant 0 : index
    %273 = vector.load %arg19[%c24_189, %c0_190] : memref<32x512xf32, #tpu.memory_space<vmem>>, vector<4x256xf32>
    %c0_191 = arith.constant 0 : index
    %c8_192 = arith.constant 8 : index
    %c0_193 = arith.constant 0 : index
    %274 = vector.load %arg18[%c0_191, %c8_192, %c0_193] : memref<2x12x256xf32, #tpu.memory_space<vmem>>, vector<1x4x256xf32>
    %275 = vector.shape_cast %274 : vector<1x4x256xf32> to vector<4x256xf32>
    %276 = vector.shape_cast %273 : vector<4x256xf32> to vector<1x4x256xf32>
    tpu.vector_store %arg18[%c0_191, %c8_192, %c0_193], %276 {strides = array<i32>} : memref<2x12x256xf32, #tpu.memory_space<vmem>>, vector<1x4x256xf32>,
    %c0_194 = arith.constant 0 : index
    %c256_195 = arith.constant 256 : index
    %277 = vector.load %arg19[%c0_194, %c256_195] : memref<32x512xf32, #tpu.memory_space<vmem>>, vector<4x256xf32>
    %c1_196 = arith.constant 1 : index
    %c0_197 = arith.constant 0 : index
    %c0_198 = arith.constant 0 : index
    %278 = vector.load %arg18[%c1_196, %c0_197, %c0_198] : memref<2x12x256xf32, #tpu.memory_space<vmem>>, vector<1x4x256xf32>
    %279 = vector.shape_cast %278 : vector<1x4x256xf32> to vector<4x256xf32>
    %280 = vector.shape_cast %277 : vector<4x256xf32> to vector<1x4x256xf32>
    tpu.vector_store %arg18[%c1_196, %c0_197, %c0_198], %280 {strides = array<i32>} : memref<2x12x256xf32, #tpu.memory_space<vmem>>, vector<1x4x256xf32>,
    %c16_199 = arith.constant 16 : index
    %c256_200 = arith.constant 256 : index
    %281 = vector.load %arg19[%c16_199, %c256_200] : memref<32x512xf32, #tpu.memory_space<vmem>>, vector<4x256xf32>
    %c1_201 = arith.constant 1 : index
    %c4_202 = arith.constant 4 : index
    %c0_203 = arith.constant 0 : index
    %282 = vector.load %arg18[%c1_201, %c4_202, %c0_203] : memref<2x12x256xf32, #tpu.memory_space<vmem>>, vector<1x4x256xf32>
    %283 = vector.shape_cast %282 : vector<1x4x256xf32> to vector<4x256xf32>
    %284 = vector.shape_cast %281 : vector<4x256xf32> to vector<1x4x256xf32>
    tpu.vector_store %arg18[%c1_201, %c4_202, %c0_203], %284 {strides = array<i32>} : memref<2x12x256xf32, #tpu.memory_space<vmem>>, vector<1x4x256xf32>,
    %c24_204 = arith.constant 24 : index
    %c256_205 = arith.constant 256 : index
    %285 = vector.load %arg19[%c24_204, %c256_205] : memref<32x512xf32, #tpu.memory_space<vmem>>, vector<4x256xf32>
    %c1_206 = arith.constant 1 : index
    %c8_207 = arith.constant 8 : index
    %c0_208 = arith.constant 0 : index
    %286 = vector.load %arg18[%c1_206, %c8_207, %c0_208] : memref<2x12x256xf32, #tpu.memory_space<vmem>>, vector<1x4x256xf32>
    %287 = vector.shape_cast %286 : vector<1x4x256xf32> to vector<4x256xf32>
    %288 = vector.shape_cast %285 : vector<4x256xf32> to vector<1x4x256xf32>
    tpu.vector_store %arg18[%c1_206, %c8_207, %c0_208], %288 {strides = array<i32>} : memref<2x12x256xf32, #tpu.memory_space<vmem>>, vector<1x4x256xf32>,
    return
  }
  func.func @transform_0(%arg0: i32) -> (i32, i32, i32) {
    %c0_i32 = arith.constant 0 : i32
    %c0_i32_0 = arith.constant 0 : i32
    %c0_i32_1 = arith.constant 0 : i32
    return %arg0, %c0_i32, %c0_i32_0 : i32, i32, i32
  }
  func.func @transform_1(%arg0: i32) -> (i32, i32) {
    %c0_i32 = arith.constant 0 : i32
    %c0_i32_0 = arith.constant 0 : i32
    %c0_i32_1 = arith.constant 0 : i32
    return %c0_i32, %c0_i32_0 : i32, i32
  }
  func.func @transform_2(%arg0: i32) -> (i32, i32) {
    %c0_i32 = arith.constant 0 : i32
    %c0_i32_0 = arith.constant 0 : i32
    %c0_i32_1 = arith.constant 0 : i32
    return %c0_i32, %c0_i32_0 : i32, i32
  }
  func.func @transform_3(%arg0: i32) -> (i32, i32) {
    %c0_i32 = arith.constant 0 : i32
    %c0_i32_0 = arith.constant 0 : i32
    %c0_i32_1 = arith.constant 0 : i32
    return %c0_i32, %c0_i32_0 : i32, i32
  }
  func.func @transform_4(%arg0: i32) -> (i32, i32) {
    %c0_i32 = arith.constant 0 : i32
    %c0_i32_0 = arith.constant 0 : i32
    %c0_i32_1 = arith.constant 0 : i32
    return %c0_i32, %c0_i32_0 : i32, i32
  }
  func.func @transform_5(%arg0: i32) -> (i32, i32) {
    %c0_i32 = arith.constant 0 : i32
    %c0_i32_0 = arith.constant 0 : i32
    %c0_i32_1 = arith.constant 0 : i32
    return %c0_i32, %c0_i32_0 : i32, i32
  }
  func.func @transform_6(%arg0: i32) -> (i32, i32, i32) {
    %c0_i32 = arith.constant 0 : i32
    %c0_i32_0 = arith.constant 0 : i32
    %c0_i32_1 = arith.constant 0 : i32
    %c0_i32_2 = arith.constant 0 : i32
    return %c0_i32, %c0_i32_0, %c0_i32_1 : i32, i32, i32
  }
  func.func @transform_7(%arg0: i32) -> (i32, i32) {
    %c0_i32 = arith.constant 0 : i32
    %c0_i32_0 = arith.constant 0 : i32
    %c0_i32_1 = arith.constant 0 : i32
    return %c0_i32, %c0_i32_0 : i32, i32
  }
  func.func @transform_8(%arg0: i32) -> (i32, i32) {
    %c0_i32 = arith.constant 0 : i32
    %c0_i32_0 = arith.constant 0 : i32
    %c0_i32_1 = arith.constant 0 : i32
    return %c0_i32, %c0_i32_0 : i32, i32
  }
  func.func @transform_9(%arg0: i32) -> (i32, i32) {
    %c0_i32 = arith.constant 0 : i32
    %c0_i32_0 = arith.constant 0 : i32
    %c0_i32_1 = arith.constant 0 : i32
    return %c0_i32, %c0_i32_0 : i32, i32
  }
  func.func @transform_10(%arg0: i32) -> (i32, i32) {
    %c0_i32 = arith.constant 0 : i32
    %c0_i32_0 = arith.constant 0 : i32
    %c0_i32_1 = arith.constant 0 : i32
    return %c0_i32, %c0_i32_0 : i32, i32
  }
  func.func @transform_11(%arg0: i32) -> (i32, i32, i32) {
    %c0_i32 = arith.constant 0 : i32
    %c0_i32_0 = arith.constant 0 : i32
    %c0_i32_1 = arith.constant 0 : i32
    %c0_i32_2 = arith.constant 0 : i32
    return %c0_i32, %c0_i32_0, %c0_i32_1 : i32, i32, i32
  }
  func.func @transform_12(%arg0: i32) -> (i32, i32) {
    %c0_i32 = arith.constant 0 : i32
    %c0_i32_0 = arith.constant 0 : i32
    %c0_i32_1 = arith.constant 0 : i32
    return %c0_i32, %c0_i32_0 : i32, i32
  }
  func.func @transform_13(%arg0: i32) -> (i32, i32) {
    %c0_i32 = arith.constant 0 : i32
    %c0_i32_0 = arith.constant 0 : i32
    %c0_i32_1 = arith.constant 0 : i32
    return %c0_i32, %c0_i32_0 : i32, i32
  }
  func.func @transform_14(%arg0: i32) -> (i32, i32) {
    %c0_i32 = arith.constant 0 : i32
    %c0_i32_0 = arith.constant 0 : i32
    %c0_i32_1 = arith.constant 0 : i32
    return %c0_i32, %c0_i32_0 : i32, i32
  }
  func.func @transform_15(%arg0: i32) -> (i32, i32) {
    %c0_i32 = arith.constant 0 : i32
    %c0_i32_0 = arith.constant 0 : i32
    %c0_i32_1 = arith.constant 0 : i32
    return %c0_i32, %c0_i32_0 : i32, i32
  }
  func.func @transform_16(%arg0: i32) -> (i32, i32, i32) {
    %c0_i32 = arith.constant 0 : i32
    %c0_i32_0 = arith.constant 0 : i32
    %c0_i32_1 = arith.constant 0 : i32
    %c0_i32_2 = arith.constant 0 : i32
    return %c0_i32, %c0_i32_0, %c0_i32_1 : i32, i32, i32
  }
  func.func @transform_17(%arg0: i32) -> (i32, i32, i32) {
    %c0_i32 = arith.constant 0 : i32
    %c0_i32_0 = arith.constant 0 : i32
    %c0_i32_1 = arith.constant 0 : i32
    return %arg0, %c0_i32, %c0_i32_0 : i32, i32, i32
  }
}

</mosaic_0001>

<bundles_post_ra>
// kernel: tpu_custom_call.1
= control target key start
LH: loop header
LB: loop body
LE: loop exit
PB: predicated region body
PF: predicated region fallthrough
CT: control target
= control target key end

     0   :  { %s5096_s22 = smov 0   ;;  %s6185_s0 = inlined_call_operand.vmem [shape: f32[4,4,256], index: 0, kind: input, shape index: {}]   ;;  %s6186_s1 = inlined_call_operand.vmem [shape: f32[9,512], index: 1, kind: input, shape index: {}]   ;;  %s6187_s2 = inlined_call_operand.vmem [shape: f32[8,1], index: 2, kind: input, shape index: {}]   ;;  %s6188_s3 = inlined_call_operand.vmem [shape: f32[8,1], index: 3, kind: input, shape index: {}]   ;;  %s6189_s4 = inlined_call_operand.vmem [shape: bf16[8,8], index: 4, kind: input, shape index: {}]   ;;  %s6190_s5 = inlined_call_operand.vmem [shape: f32[8,1], index: 5, kind: input, shape index: {}]   ;;  %s6191_s6 = inlined_call_operand.vmem [shape: bf16[9,8,8], index: 6, kind: input, shape index: {}]   ;;  %s6192_s7 = inlined_call_operand.vmem [shape: f32[16,1], index: 7, kind: input, shape index: {}]   ;;  %s6193_s8 = inlined_call_operand.vmem [shape: f32[16,1], index: 8, kind: input, shape index: {}]   ;;  %s6194_s9 = inlined_call_operand.vmem [shape: bf16[8,16], index: 9, kind: input, shape index: {}]   ;;  %s6195_s10 = inlined_call_operand.vmem [shape: f32[8,1], index: 10, kind: input, shape index: {}]   ;;  %s6196_s11 = inlined_call_operand.vmem [shape: bf16[9,8,8], index: 11, kind: input, shape index: {}]   ;;  %s6197_s12 = inlined_call_operand.vmem [shape: f32[24,1], index: 12, kind: input, shape index: {}]   ;;  %s6198_s13 = inlined_call_operand.vmem [shape: f32[24,1], index: 13, kind: input, shape index: {}]   ;;  %s6199_s14 = inlined_call_operand.vmem [shape: bf16[8,24], index: 14, kind: input, shape index: {}]   ;;  %s6200_s15 = inlined_call_operand.vmem [shape: f32[8,1], index: 15, kind: input, shape index: {}]   ;;  %s6201_s16 = inlined_call_operand.vmem [shape: bf16[9,8,8], index: 16, kind: input, shape index: {}]   ;;  %s6202_s17 = inlined_call_operand.vmem [shape: f32[4,12,256], index: 17, kind: output, shape index: {}]  }
   0x1   :  { %6214 = sst [smem:[#allocation5_spill]] %s6185_s0 }
   0x2   :  { %6215 = sst [smem:[#allocation6_spill]] %s6186_s1 }
   0x3 LB: > { %s4603_s23 = sadd.s32 4294967295, %s4994_s22   ;;  %p4607_p0 = scmp.ge.s32.totalorder %s4994_s22, 1  ;;  %s4994_s22 = sphi %s5096_s22, %s27_s22  }
   0x4   : > { %p489_p1 = scmp.lt.s32.totalorder %s4994_s22, 3 }
   0x6   : > { %p490_p2 = pnand %p4607_p0, %p489_p1 }
   0x8   : > { %493 = sbr.rel (%p490_p2) target bundleno = 2151 (0x867), region = 88 }
   0xf   : > { %v594_v0 = vld [vmem:[%s6187_s2] sm:$0xff]  ;;  %s4608_s25 = sshll.u32 %s4603_s23, 1  ;;  %v6204_v1 = vmov 0   ;;  %v4997_v2 = vmov 0.0   ;;  %s6216_s29 = sld [smem:[#allocation5_spill]]  ;;  %vm627_vm0 = vcmask 1043456   ;;  %v734_v53 = vlaneseq }
  0x10   : > { %4984 = vset.pattern.permute.xlu0 %v6204_v1  ;;  %p544_p3 = scmp.lt.s32.totalorder %s4608_s25, 3  ;;  %572 = vst [vmem:[#allocation2 + $0x8] sm:$0xf0] %v4997_v2  ;;  %571 = vst [vmem:[#allocation2] sm:$0xf0] %v4997_v2  ;;  %672 = vmatprep.mubr.bf16.mxu0 %v6204_v1  ;;  %v604_v3 = vld [vmem:[%s6188_s3] sm:$0xff] }
  0x11   : > { %573 = vst [vmem:[#allocation2 + $0x10] sm:$0xf0] %v4997_v2  ;;  %574 = vst [vmem:[#allocation2 + $0x18] sm:$0xf0] %v4997_v2  ;;  %597 = vperm.xlu0 %4984, %v594_v0   ;;  %713 = vmatprep.mubr.bf16.mxu1 %v6204_v1  ;;  %v618_v36 = vld [vmem:[%s6189_s4] sm:$0xf] }
  0x12   : > { %s6227_s25 = smov (!%p544_p3, %s4608_s25), 3  ;;  %4985 = vset.pattern.permute.xlu1 %v6204_v1  ;;  %vm623_vm1 = vcmask 64512   ;;  %s4998_s23 = smov 16   ;;  %v1998_v49 = vld [vmem:[%s6192_s7] sm:$0xff]  ;;  %v1999_v51 = vld [vmem:[%s6192_s7 + $0x8] sm:$0xff]  ;;  %v743_v54 = vshrl.u32 %v734_v53, 7 }
  0x13   : > { %s4772_s5 = sshll.u32 %s6227_s25, 3  ;;  %s4773_s18 = sshll.u32 %s6227_s25, 5  ;;  %v2018_v50 = vld [vmem:[%s6193_s8] sm:$0xff]  ;;  %v2019_v52 = vld [vmem:[%s6193_s8 + $0x8] sm:$0xff]  ;;  %v5233_v55 = vand.u32 127, %v734_v53  ;;  %vm2051_vm10 = vcmask 130048  }
  0x14   : > { %s5120_s20 = scalar_lea.vmem %s6202_s17, %s4773_s18  ;;  %s4999_s15 = smov 17   ;;  %v5235_v56 = vsub.s32 1, %v743_v54  ;;  %v5237_v57 = vsub.s32 2, %v743_v54  ;;  %v5249_v63 = vsub.s32 0, %v743_v54  ;;  %v5251_v0 = vsub.s32 3, %v743_v54 }
  0x15   : > { %607 = vperm.xlu0 %4984, %v604_v3   ;;  %s548_s30 = scalar_lea.vmem %s6216_s29, %s4772_s5  ;;  %s5000_s24 = smov 15   ;;  %vm779_vm2 = vcmp.lt.s32.totalorder %v5233_v55, 16  ;;  %vm736_vm3 = vcmp.lt.s32.totalorder %v5233_v55, 17  ;;  %vm1017_vm4 = vcmp.lt.s32.totalorder %v5233_v55, 15  ;;  %vm1162_vm5 = vcmp.lt.s32.totalorder %v5233_v55, 1 }
  0x16   : > { %v558_v4 = vld [vmem:[%s548_s30] sm:$0xff]  ;;  %v4614_v5 = vld [vmem:[%s548_s30 + $0x8] sm:$0xff]  ;;  %s5001_s25 = smov 1   ;;  %s5002_s26 = smov 127   ;;  %vm1414_vm6 = vcmp.lt.s32.totalorder %v5233_v55, 127  ;;  %vm1559_vm7 = vcmp.lt.s32.totalorder %v5233_v55, 113 }
  0x17   : > { %v560_v6 = vcombine.high %v558_v4, %v558_v4  ;;  %562 = vst [vmem:[#allocation2] sm:$0xf] %v558_v4  ;;  %v567_v7 = vcombine.high %v4614_v5, %v4614_v5  ;;  %569 = vst [vmem:[#allocation2 + $0x10] sm:$0xf] %v4614_v5  ;;  %s6212_s27 = smov 113   ;;  %s6208_s5 = smov 112  }
  0x18   : > { %s6210_s28 = smov 111   ;;  %s6217_s30 = sld [smem:[#allocation6_spill]]  ;;  %vm1704_vm8 = vcmp.lt.s32.totalorder %v5233_v55, 112  ;;  %vm1849_vm9 = vcmp.lt.s32.totalorder %v5233_v55, 111  ;;  %vm3320_vm11 = vcmask 195584  }
  0x19   : > { %563 = vst [vmem:[#allocation2 + $0x8] sm:$0xf] %v560_v6  ;;  %570 = vst [vmem:[#allocation2 + $0x18] sm:$0xf] %v567_v7  ;;  %v4754_v55 = vld [vmem:[%s6201_s16 + $0x1c] sm:$0xf] }
  0x1e   : > { %v4508_v8 = vld [vmem:[#allocation2] sm:$0xf]  ;;  %v4526_v9 = vld [vmem:[#allocation2 + $0x10] sm:$0xf] }
  0x1f   : > { %4510 = vst [vmem:[%s5120_s20] sm:$0xf] %v4508_v8  ;;  %4764 = vst [vmem:[%s5120_s20 + $0x20] sm:$0xf] %v4526_v9  ;;  %v5126_v12 = vld [vmem:[#allocation2] sm:$0xff]  ;;  %v5132_v16 = vld [vmem:[#allocation2 + $0x10] sm:$0xff] }
  0x20   : > { %v4509_v10 = vld [vmem:[#allocation2 + $0x8] sm:$0xf]  ;;  %v4527_v11 = vld [vmem:[#allocation2 + $0x18] sm:$0xf] }
  0x21   : > { %4511 = vst [vmem:[%s5120_s20 + $0x8] sm:$0xf] %v4509_v10  ;;  %4765 = vst [vmem:[%s5120_s20 + $0x28] sm:$0xf] %v4527_v11  ;;  %v5128_v14 = vld [vmem:[#allocation2 + $0x8] sm:$0xff]  ;;  %v5130_v15 = vld [vmem:[#allocation2 + $0x18] sm:$0xff] }
  0x22   : > { %v4615_v58 = vld [vmem:[%s6217_s30 + $0x1] ss:$8 sm:$0xf]  ;;  %v575_v10 = vld [vmem:[%s6217_s30] ss:$8 sm:$0xf] }
  0x23   : > { %v5244_v61 = vrot.slane %v4615_v58, %v5235_v56  ;;  %v5247_v62 = vrot.slane %v4615_v58, %v5237_v57  ;;  %v5260_v8 = vrot.slane %v4615_v58, %v5249_v63  ;;  %v5263_v9 = vrot.slane %v4615_v58, %v5251_v0 }
  0x90   : > { %v598_v13 = vpop.permute.xlu0 %597 }
  0x91   : > { %v601_v17 = vmul.f32 %v598_v13, %v5128_v14  ;;  %v603_v18 = vmul.f32 %v598_v13, %v5130_v15  ;;  %v600_v19 = vmul.f32 %v598_v13, %v5126_v12  ;;  %v602_v20 = vmul.f32 %v598_v13, %v5132_v16 }
  0x94   : > { %v608_v21 = vpop.permute.xlu0 %607 }
  0x95   : > { %v611_v22 = vadd.f32 %v608_v21, %v601_v17  ;;  %v613_v23 = vadd.f32 %v608_v21, %v603_v18  ;;  %v610_v24 = vadd.f32 %v608_v21, %v600_v19  ;;  %v612_v25 = vadd.f32 %v608_v21, %v602_v20 }
  0x96   : > { %v5274_v20 = vrot.slane %v575_v10, %v5235_v56 }
  0x97   : > { %v615_v26 = vmax.f32 %v611_v22, 0.0  ;;  %v617_v27 = vmax.f32 %v613_v23, 0.0  ;;  %v614_v28 = vmax.f32 %v610_v24, 0.0  ;;  %v616_v29 = vmax.f32 %v612_v25, 0.0 }
  0x98   : > { %v5280_v24 = vrot.slane %v575_v10, %v5237_v57 }
  0x99   : > { %v620_v30 = vpack.c.bf16 %v615_v26, %v615_v26  ;;  %v622_v31 = vpack.c.bf16 %v617_v27, %v617_v27  ;;  %v619_v32 = vpack.c.bf16 %v614_v28, %v614_v28  ;;  %v621_v33 = vpack.c.bf16 %v616_v29, %v616_v29 }
  0x9b   : > { %4622 = vmatprep.subr.msk.bf16.mxu0 %vm627_vm0, %v620_v30  ;;  %4624 = vmatprep.subr.msk.bf16.mxu1 %vm627_vm0, %v622_v31  ;;  %v629_v34 = vsel %vm627_vm0, %v619_v32, 0  ;;  %v635_v35 = vsel %vm627_vm0, %v621_v33, 0  ;;  %v5287_v31 = vrot.slane %v575_v10, %v5249_v63  ;;  %v5290_v32 = vrot.slane %v575_v10, %v5251_v0  ;;  %v4617_v10 = vld [vmem:[%s6217_s30 + $0x3] ss:$8 sm:$0xf] }
  0x9c   : > { %641 = vmatpush1.bf16.msra.mxu0 %v629_v34  ;;  %682 = vmatpush1.bf16.msra.mxu1 %v635_v35 }
  0x9f   : > { %4623 = vmatmul.mubr.msk.bf16.vlgmr.msra.gmra.mrb[0].mxu0 %vm623_vm1, %v618_v36  ;;  %4625 = vmatmul.mubr.msk.bf16.vlgmr.msra.gmra.mrb[0].mxu1 %vm623_vm1, %v618_v36 }
  0xa0   : > { %862 = vmatprep.mubr.bf16.mxu0 %v6204_v1  ;;  %903 = vmatprep.mubr.bf16.mxu1 %v6204_v1 }
 0x172   : > { %v674_v37 = vpop.f32.mrb[0].mxu0  ;;  %v715_v38 = vpop.f32.mrb[0].mxu1 }
 0x173   : > { %v5149_v39 = vmax.f32 %v674_v37, 0.0  ;;  %v5151_v40 = vmax.f32 %v715_v38, 0.0  ;;  %v676_v41 = vpop.f32.mrb[1].mxu0  ;;  %v717_v42 = vpop.f32.mrb[1].mxu1  ;;  %v4626_v38 = vld [vmem:[%s6191_s6 + $0x4] sm:$0xf] }
 0x174   : > { %v678_v43 = vpop.f32.mrb[2].mxu0  ;;  %v719_v44 = vpop.f32.mrb[2].mxu1  ;;  %v5157_v47 = vmax.f32 %v676_v41, 0.0  ;;  %v5159_v48 = vmax.f32 %v717_v42, 0.0 }
 0x175   : > { %775 = vrot.lane.b32.xlu0 %v5151_v40, %s4998_s23  ;;  %771 = vrot.lane.b32.xlu1 %v5149_v39, %s4998_s23  ;;  %v679_v45 = vpop.f32.mrb[3].mxu0  ;;  %v720_v46 = vpop.f32.mrb[3].mxu1  ;;  %v4616_v37 = vld [vmem:[%s6217_s30 + $0x2] ss:$8 sm:$0xf] }
 0x176   : > { %v5308_v45 = vrot.slane %v4616_v37, %v5235_v56 }
 0x179   : > { %726 = vrot.lane.b32.xlu0 %v5149_v39, %s4999_s15  ;;  %773 = vrot.lane.b32.xlu1 %v5157_v47, %s4998_s23 }
 0x17d   : > { %730 = vrot.lane.b32.xlu0 %v5151_v40, %s4999_s15  ;;  %777 = vrot.lane.b32.xlu1 %v5159_v48, %s4998_s23 }
 0x181   : > { %1009 = vrot.lane.b32.xlu0 %v5149_v39, %s5000_s24  ;;  %728 = vrot.lane.b32.xlu1 %v5157_v47, %s4999_s15 }
 0x185   : > { %1013 = vrot.lane.b32.xlu0 %v5151_v40, %s5000_s24  ;;  %732 = vrot.lane.b32.xlu1 %v5159_v48, %s4999_s15 }
 0x189   : > { %1154 = vrot.lane.b32.xlu0 %v5149_v39, %s5001_s25  ;;  %1011 = vrot.lane.b32.xlu1 %v5157_v47, %s5000_s24 }
 0x18d   : > { %1158 = vrot.lane.b32.xlu0 %v5151_v40, %s5001_s25  ;;  %1015 = vrot.lane.b32.xlu1 %v5159_v48, %s5000_s24 }
 0x191   : > { %1406 = vrot.lane.b32.xlu0 %v5149_v39, %s5002_s26  ;;  %1156 = vrot.lane.b32.xlu1 %v5157_v47, %s5001_s25 }
 0x195   : > { %1410 = vrot.lane.b32.xlu0 %v5151_v40, %s5002_s26  ;;  %1160 = vrot.lane.b32.xlu1 %v5159_v48, %s5001_s25 }
 0x199   : > { %1551 = vrot.lane.b32.xlu0 %v5149_v39, %s6212_s27  ;;  %1408 = vrot.lane.b32.xlu1 %v5157_v47, %s5002_s26 }
 0x19d   : > { %1555 = vrot.lane.b32.xlu0 %v5151_v40, %s6212_s27  ;;  %1412 = vrot.lane.b32.xlu1 %v5159_v48, %s5002_s26 }
 0x1a1   : > { %1696 = vrot.lane.b32.xlu0 %v5149_v39, %s6208_s5  ;;  %1553 = vrot.lane.b32.xlu1 %v5157_v47, %s6212_s27 }
 0x1a5   : > { %1700 = vrot.lane.b32.xlu0 %v5151_v40, %s6208_s5  ;;  %1557 = vrot.lane.b32.xlu1 %v5159_v48, %s6212_s27 }
 0x1a9   : > { %1841 = vrot.lane.b32.xlu0 %v5149_v39, %s6210_s28  ;;  %1698 = vrot.lane.b32.xlu1 %v5157_v47, %s6208_s5 }
 0x1ad   : > { %1845 = vrot.lane.b32.xlu0 %v5151_v40, %s6210_s28  ;;  %1702 = vrot.lane.b32.xlu1 %v5159_v48, %s6208_s5 }
 0x1b1   : > { %2002 = vperm.xlu0 %4984, %v1998_v49   ;;  %1843 = vrot.lane.b32.xlu1 %v5157_v47, %s6210_s28 }
 0x1b5   : > { %2022 = vperm.xlu0 %4984, %v2018_v50   ;;  %1847 = vrot.lane.b32.xlu1 %v5159_v48, %s6210_s28 }
 0x1b9   : > { %2007 = vperm.xlu1 %4985, %v1999_v51  }
 0x1bd   : > { %2027 = vperm.xlu1 %4985, %v2019_v52   ;;  %v5317_v52 = vrot.slane %v4616_v37, %v5237_v57 }
 0x1e7   : > { %v776_v59 = vpop.permute.xlu0 %775  ;;  %v772_v60 = vpop.permute.xlu1 %771 }
 0x1eb   : > { %v727_v2 = vpop.permute.xlu0 %726  ;;  %v774_v3 = vpop.permute.xlu1 %773 }
 0x1ec   : > { %v781_v4 = vsel %vm779_vm2, %v774_v3, %v776_v59  ;;  %v782_v5 = vsel %vm779_vm2, %v772_v60, %v774_v3 }
 0x1ed   : > { %v806_v6 = vmul.f32 %v5244_v61, %v782_v5  ;;  %v807_v7 = vmul.f32 %v5247_v62, %v781_v4 }
 0x1ef   : > { %v810_v11 = vpack.c.bf16 %v806_v6, %v806_v6  ;;  %v731_v13 = vpop.permute.xlu0 %730  ;;  %v778_v17 = vpop.permute.xlu1 %777  ;;  %v811_v21 = vpack.c.bf16 %v807_v7, %v807_v7  ;;  %v5333_v6 = vrot.slane %v4616_v37, %v5251_v0 }
 0x1f0   : > { %v780_v18 = vsel %vm779_vm2, %v776_v59, %v778_v17  ;;  %v783_v19 = vsel %vm779_vm2, %v778_v17, %v772_v60 }
 0x1f1   : > { %v805_v22 = vmul.f32 %v5260_v8, %v783_v19  ;;  %v808_v23 = vmul.f32 %v5263_v9, %v780_v18  ;;  %4627 = vmatprep.subr.msk.bf16.mxu0 %vm627_vm0, %v810_v11  ;;  %v825_v36 = vsel %vm627_vm0, %v811_v21, 0 }
 0x1f3   : > { %v809_v25 = vpack.c.bf16 %v805_v22, %v805_v22  ;;  %v812_v26 = vpack.c.bf16 %v808_v23, %v808_v23  ;;  %v1010_v27 = vpop.permute.xlu0 %1009  ;;  %v729_v28 = vpop.permute.xlu1 %728  ;;  %v5348_v23 = vrot.slane %v4617_v10, %v5235_v56 }
 0x1f4   : > { %v738_v29 = vsel %vm736_vm3, %v729_v28, %v731_v13  ;;  %v739_v30 = vsel %vm736_vm3, %v727_v2, %v729_v28 }
 0x1f5   : > { %v763_v33 = vmul.f32 %v5274_v20, %v739_v30  ;;  %v764_v34 = vmul.f32 %v5280_v24, %v738_v29  ;;  %4629 = vmatprep.subr.msk.bf16.mxu1 %vm627_vm0, %v812_v26  ;;  %v819_v35 = vsel %vm627_vm0, %v809_v25, 0  ;;  %v770_v26 = vld [vmem:[%s6191_s6] sm:$0xf] }
 0x1f6   : > { %831 = vmatpush1.bf16.msra.mxu0 %v819_v35  ;;  %872 = vmatpush1.bf16.msra.mxu1 %v825_v36 }
 0x1f7   : > { %v767_v41 = vpack.c.bf16 %v763_v33, %v763_v33  ;;  %v733_v42 = vpop.permute.xlu1 %732  ;;  %v768_v46 = vpack.c.bf16 %v764_v34, %v764_v34  ;;  %v1014_v49 = vpop.permute.xlu0 %1013 }
 0x1f8   : > { %v737_v43 = vsel %vm736_vm3, %v731_v13, %v733_v42  ;;  %v740_v44 = vsel %vm736_vm3, %v733_v42, %v727_v2  ;;  %v5326_v2 = vrot.slane %v4616_v37, %v5249_v63  ;;  %v5363_v37 = vrot.slane %v4617_v10, %v5249_v63 }
 0x1f9   : > { %v762_v50 = vmul.f32 %v5287_v31, %v740_v44  ;;  %v765_v51 = vmul.f32 %v5290_v32, %v737_v43  ;;  %4628 = vmatmul.mubr.msk.bf16.vlgmr.msra.gmra.mrb[4].mxu0 %vm623_vm1, %v4626_v38  ;;  %4630 = vmatmul.mubr.msk.bf16.vlgmr.msra.gmra.mrb[4].mxu1 %vm623_vm1, %v4626_v38  ;;  %v922_v5 = vsel %vm627_vm0, %v768_v46, 0  ;;  %v5366_v38 = vrot.slane %v4617_v10, %v5251_v0 }
 0x1fa   : > { %4631 = vmatprep.subr.msk.bf16.mxu0 %vm627_vm0, %v767_v41  ;;  %959 = vmatprep.mubr.bf16.mxu0 %v6204_v1 }
 0x1fb   : > { %v766_v53 = vpack.c.bf16 %v762_v50, %v762_v50  ;;  %v769_v54 = vpack.c.bf16 %v765_v51, %v765_v51  ;;  %v1012_v58 = vpop.permute.xlu1 %1011  ;;  %1000 = vmatprep.mubr.bf16.mxu1 %v6204_v1  ;;  %v1155_v11 = vpop.permute.xlu0 %1154 }
 0x1fc   : > { %v1019_v59 = vsel %vm1017_vm4, %v1012_v58, %v1014_v49  ;;  %v1020_v60 = vsel %vm1017_vm4, %v1010_v27, %v1012_v58 }
 0x1fd   : > { %v1044_v3 = vmul.f32 %v5308_v45, %v1020_v60  ;;  %4633 = vmatprep.subr.msk.bf16.mxu1 %vm627_vm0, %v769_v54  ;;  %v916_v4 = vsel %vm627_vm0, %v766_v53, 0  ;;  %v1045_v7 = vmul.f32 %v5317_v52, %v1019_v59 }
 0x1fe   : > { %928 = vmatpush1.bf16.msra.mxu0 %v916_v4  ;;  %969 = vmatpush1.bf16.msra.mxu1 %v922_v5 }
 0x1ff   : > { %v1048_v13 = vpack.c.bf16 %v1044_v3, %v1044_v3  ;;  %v1016_v17 = vpop.permute.xlu1 %1015  ;;  %v1049_v25 = vpack.c.bf16 %v1045_v7, %v1045_v7  ;;  %v1159_v34 = vpop.permute.xlu0 %1158  ;;  %v4635_v3 = vld [vmem:[%s6191_s6 + $0x8] sm:$0xf] }
 0x200   : > { %v1018_v18 = vsel %vm1017_vm4, %v1014_v49, %v1016_v17  ;;  %v1021_v19 = vsel %vm1017_vm4, %v1016_v17, %v1010_v27  ;;  %v5354_v27 = vrot.slane %v4617_v10, %v5237_v57  ;;  %v1300_v10 = vpack.c.bf16 %v5157_v47, %v5157_v47 }
 0x201   : > { %v1043_v21 = vmul.f32 %v5326_v2, %v1021_v19  ;;  %v1046_v22 = vmul.f32 %v5333_v6, %v1018_v18  ;;  %4636 = vmatprep.subr.msk.bf16.mxu0 %vm627_vm0, %v1048_v13  ;;  %v1063_v42 = vsel %vm627_vm0, %v1049_v25, 0  ;;  %v4618_v13 = vld [vmem:[%s6217_s30 + $0x5] ss:$8 sm:$0xf] }
 0x202   : > { %v5406_v18 = vrot.slane %v4618_v13, %v5251_v0 }
 0x203   : > { %v1047_v28 = vpack.c.bf16 %v1043_v21, %v1043_v21  ;;  %v1050_v29 = vpack.c.bf16 %v1046_v22, %v1046_v22  ;;  %v1157_v30 = vpop.permute.xlu1 %1156  ;;  %v1407_v4 = vpop.permute.xlu0 %1406  ;;  %v1299_v22 = vpack.c.bf16 %v5149_v39, %v5149_v39  ;;  %v5426_v39 = vrot.slane %v4618_v13, %v5237_v57 }
 0x204   : > { %v1165_v33 = vsel %vm1162_vm5, %v1155_v11, %v1157_v30  ;;  %v1164_v41 = vsel %vm1162_vm5, %v1157_v30, %v1159_v34  ;;  %v4640_v30 = vld [vmem:[%s6191_s6 + $0xc] sm:$0xf] }
 0x205   : > { %v1189_v35 = vmul.f32 %v5348_v23, %v1165_v33  ;;  %4632 = vmatmul.mubr.msk.bf16.vlgmr.msra.gmra.mrb[4].mxu0 %vm623_vm1, %v770_v26  ;;  %4634 = vmatmul.mubr.msk.bf16.vlgmr.msra.gmra.mrb[4].mxu1 %vm623_vm1, %v770_v26  ;;  %v1057_v36 = vsel %vm627_vm0, %v1047_v28, 0  ;;  %v1190_v50 = vmul.f32 %v5354_v27, %v1164_v41 }
 0x206   : > { %4638 = vmatprep.subr.msk.bf16.mxu1 %vm627_vm0, %v1050_v29  ;;  %1069 = vmatpush1.bf16.msra.mxu0 %v1057_v36  ;;  %v1301_v29 = vpack.c.bf16 %v5151_v40, %v5151_v40 }
 0x207   : > { %v1193_v43 = vpack.c.bf16 %v1189_v35, %v1189_v35  ;;  %1110 = vmatpush1.bf16.msra.mxu1 %v1063_v42  ;;  %v1161_v44 = vpop.permute.xlu1 %1160  ;;  %1100 = vmatprep.mubr.bf16.mxu0 %v6204_v1  ;;  %v1194_v58 = vpack.c.bf16 %v1190_v50, %v1190_v50  ;;  %v1411_v47 = vpop.permute.xlu0 %1410  ;;  %v1309_v35 = vsel %vm627_vm0, %v1299_v22, 0 }
 0x208   : > { %v1163_v46 = vsel %vm1162_vm5, %v1159_v34, %v1161_v44  ;;  %v1166_v49 = vsel %vm1162_vm5, %v1161_v44, %v1155_v11  ;;  %1141 = vmatprep.mubr.bf16.mxu1 %v6204_v1  ;;  %v1302_v11 = vpack.c.bf16 %v5159_v48, %v5159_v48  ;;  %v5403_v48 = vrot.slane %v4618_v13, %v5235_v56  ;;  %v4619_v44 = vld [vmem:[%s6217_s30 + $0x6] ss:$8 sm:$0xf] }
 0x209   : > { %v1188_v51 = vmul.f32 %v5363_v37, %v1166_v49  ;;  %v1191_v53 = vmul.f32 %v5366_v38, %v1163_v46  ;;  %4641 = vmatprep.subr.msk.bf16.mxu0 %vm627_vm0, %v1193_v43  ;;  %v1208_v7 = vsel %vm627_vm0, %v1194_v58, 0  ;;  %v5422_v34 = vrot.slane %v4618_v13, %v5249_v63 }
 0x20a   : > { %v1315_v40 = vsel %vm627_vm0, %v1301_v29, 0  ;;  %v5461_v13 = vrot.slane %v4619_v44, %v5249_v63 }
 0x20b   : > { %v1195_v54 = vpack.c.bf16 %v1191_v53, %v1191_v53  ;;  %v1192_v59 = vpack.c.bf16 %v1188_v51, %v1188_v51  ;;  %v1409_v60 = vpop.permute.xlu1 %1408  ;;  %v1552_v33 = vpop.permute.xlu0 %1551  ;;  %v5446_v53 = vrot.slane %v4619_v44, %v5235_v56 }
 0x20c   : > { %v1416_v19 = vsel %vm1414_vm6, %v1409_v60, %v1411_v47  ;;  %v1417_v42 = vsel %vm1414_vm6, %v1407_v4, %v1409_v60 }
 0x20d   : > { %4643 = vmatprep.subr.msk.bf16.mxu1 %vm627_vm0, %v1195_v54  ;;  %v1202_v5 = vsel %vm627_vm0, %v1192_v59, 0  ;;  %v1441_v25 = vmul.f32 %v5403_v48, %v1416_v19  ;;  %v1440_v49 = vmul.f32 %v5422_v34, %v1417_v42  ;;  %v5449_v54 = vrot.slane %v4619_v44, %v5251_v0 }
 0x20f   : > { %v1413_v17 = vpop.permute.xlu1 %1412  ;;  %v1445_v36 = vpack.c.bf16 %v1441_v25, %v1441_v25  ;;  %v1556_v50 = vpop.permute.xlu0 %1555  ;;  %v1444_v60 = vpack.c.bf16 %v1440_v49, %v1440_v49  ;;  %v5470_v25 = vrot.slane %v4619_v44, %v5237_v57 }
 0x210   : > { %v1418_v21 = vsel %vm1414_vm6, %v1413_v17, %v1407_v4  ;;  %v1415_v43 = vsel %vm1414_vm6, %v1411_v47, %v1413_v17 }
 0x211   : > { %4637 = vmatmul.mubr.msk.bf16.vlgmr.msra.gmra.mrb[4].mxu0 %vm623_vm1, %v4635_v3  ;;  %4639 = vmatmul.mubr.msk.bf16.vlgmr.msra.gmra.mrb[4].mxu1 %vm623_vm1, %v4635_v3  ;;  %v1443_v26 = vmul.f32 %v5406_v18, %v1418_v21  ;;  %v1442_v51 = vmul.f32 %v5426_v39, %v1415_v43  ;;  %v1454_v19 = vsel %vm627_vm0, %v1444_v60, 0 }
 0x212   : > { %1214 = vmatpush1.bf16.msra.mxu0 %v1202_v5  ;;  %1255 = vmatpush1.bf16.msra.mxu1 %v1208_v7 }
 0x213   : > { %4646 = vmatprep.subr.msk.bf16.mxu0 %vm627_vm0, %v1300_v10  ;;  %4648 = vmatprep.subr.msk.bf16.mxu1 %vm627_vm0, %v1302_v11  ;;  %v1554_v28 = vpop.permute.xlu1 %1553  ;;  %v1447_v41 = vpack.c.bf16 %v1443_v26, %v1443_v26  ;;  %v1446_v3 = vpack.c.bf16 %v1442_v51, %v1442_v51  ;;  %v4645_v10 = vld [vmem:[%s6191_s6 + $0x10] sm:$0xf]  ;;  %v1697_v11 = vpop.permute.xlu0 %1696  ;;  %v4620_v26 = vld [vmem:[%s6217_s30 + $0x7] ss:$8 sm:$0xf] }
 0x214   : > { %1245 = vmatprep.mubr.bf16.mxu0 %v6204_v1  ;;  %1286 = vmatprep.mubr.bf16.mxu1 %v6204_v1  ;;  %v1561_v58 = vsel %vm1559_vm7, %v1554_v28, %v1556_v50  ;;  %v1562_v22 = vsel %vm1559_vm7, %v1552_v33, %v1554_v28  ;;  %v4650_v51 = vld [vmem:[%s6191_s6 + $0x14] sm:$0xf] }
 0x215   : > { %v1586_v4 = vmul.f32 %v5446_v53, %v1561_v58  ;;  %v1460_v21 = vsel %vm627_vm0, %v1446_v3, 0  ;;  %v1585_v28 = vmul.f32 %v5461_v13, %v1562_v22 }
 0x217   : > { %v1558_v46 = vpop.permute.xlu1 %1557  ;;  %v1590_v17 = vpack.c.bf16 %v1586_v4, %v1586_v4  ;;  %v1589_v43 = vpack.c.bf16 %v1585_v28, %v1585_v28 }
 0x218   : > { %v1563_v59 = vsel %vm1559_vm7, %v1558_v46, %v1552_v33  ;;  %v1560_v29 = vsel %vm1559_vm7, %v1556_v50, %v1558_v46  ;;  %v1701_v33 = vpop.permute.xlu0 %1700 }
 0x219   : > { %v1588_v5 = vmul.f32 %v5449_v54, %v1563_v59  ;;  %v5500_v59 = vrot.slane %v4620_v26, %v5249_v63  ;;  %v1599_v3 = vsel %vm627_vm0, %v1589_v43, 0 }
 0x21b   : > { %v1699_v7 = vpop.permute.xlu1 %1698  ;;  %v1592_v47 = vpack.c.bf16 %v1588_v5, %v1588_v5  ;;  %v5507_v5 = vrot.slane %v4620_v26, %v5237_v57 }
 0x21c   : > { %v1842_v58 = vpop.permute.xlu0 %1841  ;;  %v1707_v4 = vsel %vm1704_vm8, %v1697_v11, %v1699_v7 }
 0x21d   : > { %4642 = vmatmul.mubr.msk.bf16.vlgmr.msra.gmra.mrb[4].mxu0 %vm623_vm1, %v4640_v30  ;;  %4644 = vmatmul.mubr.msk.bf16.vlgmr.msra.gmra.mrb[4].mxu1 %vm623_vm1, %v4640_v30 }
 0x21e   : > { %1321 = vmatpush1.bf16.msra.mxu0 %v1309_v35  ;;  %1362 = vmatpush1.bf16.msra.mxu1 %v1315_v40  ;;  %v5484_v35 = vrot.slane %v4620_v26, %v5235_v56  ;;  %v5490_v40 = vrot.slane %v4620_v26, %v5251_v0 }
 0x21f   : > { %4651 = vmatprep.subr.msk.bf16.mxu0 %vm627_vm0, %v1445_v36  ;;  %4653 = vmatprep.subr.msk.bf16.mxu1 %vm627_vm0, %v1447_v41  ;;  %v1703_v30 = vpop.permute.xlu1 %1702  ;;  %v1587_v36 = vmul.f32 %v5470_v25, %v1560_v29  ;;  %v1706_v41 = vsel %vm1704_vm8, %v1699_v7, %v1701_v33 }
 0x220   : > { %1352 = vmatprep.mubr.bf16.mxu0 %v6204_v1  ;;  %1393 = vmatprep.mubr.bf16.mxu1 %v6204_v1  ;;  %v1708_v42 = vsel %vm1704_vm8, %v1703_v30, %v1697_v11  ;;  %v1731_v44 = vmul.f32 %v5484_v35, %v1706_v41  ;;  %v1730_v11 = vmul.f32 %v5500_v59, %v1707_v4  ;;  %v4660_v4 = vld [vmem:[%s6191_s6 + $0x1c] sm:$0xf] }
 0x221   : > { %v1591_v46 = vpack.c.bf16 %v1587_v36, %v1587_v36  ;;  %v1733_v49 = vmul.f32 %v5490_v40, %v1708_v42  ;;  %v4655_v42 = vld [vmem:[%s6191_s6 + $0x18] sm:$0xf] }
 0x222   : > { %v1735_v60 = vpack.c.bf16 %v1731_v44, %v1731_v44 }
 0x223   : > { %v1844_v50 = vpop.permute.xlu1 %1843 }
 0x227   : > { %v1848_v7 = vpop.permute.xlu1 %1847 }
 0x228   : > { %v1853_v28 = vsel %vm1849_vm9, %v1848_v7, %v1842_v58 }
 0x229   : > { %4647 = vmatmul.mubr.msk.bf16.vlgmr.msra.gmra.mrb[4].mxu0 %vm623_vm1, %v4645_v10  ;;  %4649 = vmatmul.mubr.msk.bf16.vlgmr.msra.gmra.mrb[4].mxu1 %vm623_vm1, %v4645_v10  ;;  %v1737_v10 = vpack.c.bf16 %v1733_v49, %v1733_v49 }
 0x22a   : > { %1466 = vmatpush1.bf16.msra.mxu0 %v1454_v19  ;;  %1507 = vmatpush1.bf16.msra.mxu1 %v1460_v21  ;;  %v1705_v19 = vsel %vm1704_vm8, %v1701_v33, %v1703_v30  ;;  %v1846_v21 = vpop.permute.xlu0 %1845  ;;  %v1734_v33 = vpack.c.bf16 %v1730_v11, %v1730_v11 }
 0x22b   : > { %4656 = vmatprep.subr.msk.bf16.mxu0 %vm627_vm0, %v1590_v17  ;;  %4658 = vmatprep.subr.msk.bf16.mxu1 %vm627_vm0, %v1592_v47  ;;  %v4621_v17 = vld [vmem:[%s6217_s30 + $0x20] ss:$8 sm:$0xf]  ;;  %v1605_v47 = vsel %vm627_vm0, %v1591_v46, 0  ;;  %v1732_v26 = vmul.f32 %v5507_v5, %v1705_v19  ;;  %v1851_v29 = vsel %vm1849_vm9, %v1844_v50, %v1846_v21  ;;  %v1852_v46 = vsel %vm1849_vm9, %v1842_v58, %v1844_v50 }
 0x22c   : > { %1497 = vmatprep.mubr.bf16.mxu0 %v6204_v1  ;;  %1538 = vmatprep.mubr.bf16.mxu1 %v6204_v1  ;;  %v5522_v22 = vrot.slane %v4621_v17, %v5235_v56  ;;  %v5529_v30 = vrot.slane %v4621_v17, %v5251_v0  ;;  %v5539_v43 = vrot.slane %v4621_v17, %v5249_v63  ;;  %v1744_v0 = vsel %vm627_vm0, %v1734_v33, 0 }
 0x22d   : > { %v1736_v41 = vpack.c.bf16 %v1732_v26, %v1732_v26  ;;  %v5546_v49 = vrot.slane %v4621_v17, %v5237_v57  ;;  %v1850_v63 = vsel %vm1849_vm9, %v1846_v21, %v1848_v7 }
 0x22e   : > { %v1876_v36 = vmul.f32 %v5522_v22, %v1851_v29  ;;  %v1878_v56 = vmul.f32 %v5529_v30, %v1853_v28  ;;  %v1875_v50 = vmul.f32 %v5539_v43, %v1852_v46 }
 0x22f   : > { %v1877_v57 = vmul.f32 %v5546_v49, %v1850_v63 }
 0x230   : > { %v1880_v44 = vpack.c.bf16 %v1876_v36, %v1876_v36  ;;  %v1879_v58 = vpack.c.bf16 %v1875_v50, %v1875_v50  ;;  %v2003_v19 = vpop.permute.xlu0 %2002 }
 0x231   : > { %v2011_v21 = vmul.f32 %v2003_v19, %v5128_v14  ;;  %v2010_v28 = vmul.f32 %v2003_v19, %v5126_v12  ;;  %v2013_v33 = vmul.f32 %v2003_v19, %v5130_v15 }
 0x234   : > { %v2023_v11 = vpop.permute.xlu0 %2022 }
 0x235   : > { %4652 = vmatmul.mubr.msk.bf16.vlgmr.msra.gmra.mrb[4].mxu0 %vm623_vm1, %v4650_v51  ;;  %4654 = vmatmul.mubr.msk.bf16.vlgmr.msra.gmra.mrb[4].mxu1 %vm623_vm1, %v4650_v51  ;;  %v1882_v51 = vpack.c.bf16 %v1878_v56, %v1878_v56  ;;  %v2033_v12 = vadd.f32 %v2023_v11, %v2013_v33 }
 0x236   : > { %1611 = vmatpush1.bf16.msra.mxu0 %v1599_v3  ;;  %1652 = vmatpush1.bf16.msra.mxu1 %v1605_v47  ;;  %v1881_v3 = vpack.c.bf16 %v1877_v57, %v1877_v57  ;;  %v4665_v47 = vld [vmem:[%s6191_s6 + $0x20] sm:$0xf] }
 0x237   : > { %4661 = vmatprep.subr.msk.bf16.mxu0 %vm627_vm0, %v1735_v60  ;;  %4663 = vmatprep.subr.msk.bf16.mxu1 %vm627_vm0, %v1737_v10  ;;  %v1750_v60 = vsel %vm627_vm0, %v1736_v41, 0  ;;  %v1889_v10 = vsel %vm627_vm0, %v1879_v58, 0 }
 0x238   : > { %1642 = vmatprep.mubr.bf16.mxu0 %v6204_v1  ;;  %1683 = vmatprep.mubr.bf16.mxu1 %v6204_v1  ;;  %v1895_v17 = vsel %vm627_vm0, %v1881_v3, 0  ;;  %v2008_v7 = vpop.permute.xlu1 %2007 }
 0x23c   : > { %v2028_v29 = vpop.permute.xlu1 %2027 }
 0x241   : > { %4657 = vmatmul.mubr.msk.bf16.vlgmr.msra.gmra.mrb[4].mxu0 %vm623_vm1, %v4655_v42  ;;  %4659 = vmatmul.mubr.msk.bf16.vlgmr.msra.gmra.mrb[4].mxu1 %vm623_vm1, %v4655_v42  ;;  %v2012_v42 = vmul.f32 %v2003_v19, %v5132_v16 }
 0x242   : > { %1756 = vmatpush1.bf16.msra.mxu0 %v1744_v0  ;;  %1797 = vmatpush1.bf16.msra.mxu1 %v1750_v60  ;;  %v2030_v60 = vadd.f32 %v2023_v11, %v2010_v28 }
 0x243   : > { %4666 = vmatprep.subr.msk.bf16.mxu0 %vm627_vm0, %v1880_v44  ;;  %4668 = vmatprep.subr.msk.bf16.mxu1 %vm627_vm0, %v1882_v51  ;;  %v2031_v44 = vadd.f32 %v2023_v11, %v2011_v21  ;;  %v2032_v58 = vadd.f32 %v2023_v11, %v2012_v42  ;;  %v2046_v11 = vld [vmem:[%s6194_s9] sm:$0xf] }
 0x244   : > { %1787 = vmatprep.mubr.bf16.mxu0 %v6204_v1  ;;  %1828 = vmatprep.mubr.bf16.mxu1 %v6204_v1 }
 0x245   : > { %v2039_v19 = vmax.f32 %v2031_v44, 0.0 }
 0x24d   : > { %4662 = vmatmul.mubr.msk.bf16.vlgmr.msra.gmra.mrb[4].mxu0 %vm623_vm1, %v4660_v4  ;;  %4664 = vmatmul.mubr.msk.bf16.vlgmr.msra.gmra.mrb[4].mxu1 %vm623_vm1, %v4660_v4 }
 0x24e   : > { %1901 = vmatpush1.bf16.msra.mxu0 %v1889_v10  ;;  %1942 = vmatpush1.bf16.msra.mxu1 %v1895_v17 }
 0x24f   : > { %1932 = vmatprep.mubr.bf16.mxu0 %v6204_v1  ;;  %1973 = vmatprep.mubr.bf16.mxu1 %v6204_v1 }
 0x259   : > { %4667 = vmatmul.mubr.msk.bf16.vlgmr.msra.gmra.mrb[4].mxu0 %vm623_vm1, %v4665_v47  ;;  %4669 = vmatmul.mubr.msk.bf16.vlgmr.msra.gmra.mrb[4].mxu1 %vm623_vm1, %v4665_v47 }
 0x25a   : > { %2087 = vmatprep.mubr.bf16.mxu0 %v6204_v1  ;;  %2128 = vmatprep.mubr.bf16.mxu1 %v6204_v1  ;;  %v2041_v1 = vmax.f32 %v2033_v12, 0.0 }
 0x32c   : > { %v5575_v26 = vpop.f32.mrb[4].mxu0  ;;  %v5579_v36 = vpop.f32.mrb[4].mxu1 }
 0x32d   : > { %6218 = vst [vmem:[#allocation3_spill] sm:$0xff] %v5575_v26  ;;  %6219 = vst [vmem:[#allocation4_spill] sm:$0xff] %v5579_v36  ;;  %v5581_v41 = vpop.f32.mrb[5].mxu0  ;;  %v2014_v56 = vmul.f32 %v2008_v7, %v5575_v26  ;;  %v5585_v0 = vpop.f32.mrb[5].mxu1  ;;  %v2016_v51 = vmul.f32 %v2008_v7, %v5579_v36  ;;  %v2040_v36 = vmax.f32 %v2032_v58, 0.0  ;;  %v3240_v58 = vld [vmem:[%s6197_s12 + $0x8] sm:$0xff] }
 0x32e   : > { %v1938_v46 = vpop.f32.mrb[6].mxu0  ;;  %v2015_v14 = vmul.f32 %v2008_v7, %v5581_v41  ;;  %v1979_v63 = vpop.f32.mrb[6].mxu1  ;;  %v2017_v15 = vmul.f32 %v2008_v7, %v5585_v0 }
 0x32f   : > { %v1939_v50 = vpop.f32.mrb[7].mxu0  ;;  %v2034_v57 = vadd.f32 %v2028_v29, %v2014_v56  ;;  %v1980_v3 = vpop.f32.mrb[7].mxu1  ;;  %v2036_v10 = vadd.f32 %v2028_v29, %v2016_v51  ;;  %v2038_v46 = vmax.f32 %v2030_v60, 0.0 }
 0x330   : > { %v2035_v4 = vadd.f32 %v2028_v29, %v2015_v14  ;;  %v2037_v16 = vadd.f32 %v2028_v29, %v2017_v15  ;;  %v6220_v29 = vmov 0   ;;  %v3269_v3 = vld [vmem:[%s6198_s13] sm:$0xff] }
 0x331   : > { %v2042_v17 = vmax.f32 %v2034_v57, 0.0  ;;  %v2044_v47 = vmax.f32 %v2036_v10, 0.0  ;;  %v3239_v57 = vld [vmem:[%s6197_s12] sm:$0xff]  ;;  %v3241_v10 = vld [vmem:[%s6197_s12 + $0x10] sm:$0xff] }
 0x332   : > { %v2043_v21 = vmax.f32 %v2035_v4, 0.0  ;;  %v2045_v26 = vmax.f32 %v2037_v16, 0.0  ;;  %v3270_v4 = vld [vmem:[%s6198_s13 + $0x8] sm:$0xff]  ;;  %v3271_v16 = vld [vmem:[%s6198_s13 + $0x10] sm:$0xff] }
 0x333   : > { %v2047_v63 = vpack.c.bf16 %v2042_v17, %v2038_v46  ;;  %v2049_v7 = vpack.c.bf16 %v2044_v47, %v2040_v36 }
 0x334   : > { %v2048_v28 = vpack.c.bf16 %v2043_v21, %v2039_v19  ;;  %v2050_v33 = vpack.c.bf16 %v2045_v26, %v2041_v1 }
 0x336   : > { %2055 = vmatprep.subr.bf16.mxu0 %v2048_v28  ;;  %2096 = vmatprep.subr.bf16.mxu1 %v2050_v33 }
 0x337   : > { %2056 = vmatpush1.bf16.msra.mxu0 %v2047_v63  ;;  %2097 = vmatpush1.bf16.msra.mxu1 %v2049_v7 }
 0x33a   : > { %4670 = vmatmul.mubr.msk.bf16.vlgmr.msra.gmra.mrb[8].mxu0 %vm2051_vm10, %v2046_v11  ;;  %4671 = vmatmul.mubr.msk.bf16.vlgmr.msra.gmra.mrb[8].mxu1 %vm2051_vm10, %v2046_v11 }
 0x33b   : > { %2231 = vmatprep.mubr.bf16.mxu0 %v6220_v29  ;;  %2272 = vmatprep.mubr.bf16.mxu1 %v6220_v29 }
 0x40d   : > { %v2089_v56 = vpop.f32.mrb[8].mxu0  ;;  %v2130_v26 = vpop.f32.mrb[8].mxu1 }
 0x40e   : > { %v5595_v42 = vmax.f32 %v2089_v56, 0.0  ;;  %v2091_v1 = vpop.f32.mrb[9].mxu0  ;;  %v2132_v14 = vpop.f32.mrb[9].mxu1  ;;  %v5599_v51 = vmax.f32 %v2130_v26, 0.0 }
 0x40f   : > { %v5597_v36 = vmax.f32 %v2091_v1, 0.0  ;;  %v2093_v44 = vpop.f32.mrb[10].mxu0  ;;  %v2134_v60 = vpop.f32.mrb[10].mxu1  ;;  %v5603_v15 = vmax.f32 %v2132_v14, 0.0 }
 0x410   : > { %2162 = vrot.lane.b32.xlu0 %v5595_v42, %s4998_s23  ;;  %v2094_v12 = vpop.f32.mrb[11].mxu0  ;;  %v2135_v50 = vpop.f32.mrb[11].mxu1 }
 0x411   : > { %2164 = vrot.lane.b32.xlu1 %v5597_v36, %s4998_s23 }
 0x414   : > { %2166 = vrot.lane.b32.xlu0 %v5599_v51, %s4998_s23 }
 0x415   : > { %2168 = vrot.lane.b32.xlu1 %v5603_v15, %s4998_s23 }
 0x418   : > { %2141 = vrot.lane.b32.xlu0 %v5595_v42, %s4999_s15 }
 0x419   : > { %2143 = vrot.lane.b32.xlu1 %v5597_v36, %s4999_s15 }
 0x41c   : > { %2145 = vrot.lane.b32.xlu0 %v5599_v51, %s4999_s15 }
 0x41d   : > { %2147 = vrot.lane.b32.xlu1 %v5603_v15, %s4999_s15 }
 0x420   : > { %2378 = vrot.lane.b32.xlu0 %v5595_v42, %s5000_s24 }
 0x421   : > { %2380 = vrot.lane.b32.xlu1 %v5597_v36, %s5000_s24 }
 0x424   : > { %2382 = vrot.lane.b32.xlu0 %v5599_v51, %s5000_s24 }
 0x425   : > { %2384 = vrot.lane.b32.xlu1 %v5603_v15, %s5000_s24 }
 0x428   : > { %2501 = vrot.lane.b32.xlu0 %v5595_v42, %s5001_s25 }
 0x429   : > { %2503 = vrot.lane.b32.xlu1 %v5597_v36, %s5001_s25 }
 0x42c   : > { %2505 = vrot.lane.b32.xlu0 %v5599_v51, %s5001_s25 }
 0x42d   : > { %2507 = vrot.lane.b32.xlu1 %v5603_v15, %s5001_s25 }
 0x430   : > { %2731 = vrot.lane.b32.xlu0 %v5595_v42, %s5002_s26 }
 0x431   : > { %2733 = vrot.lane.b32.xlu1 %v5597_v36, %s5002_s26 }
 0x434   : > { %2735 = vrot.lane.b32.xlu0 %v5599_v51, %s5002_s26 }
 0x435   : > { %2737 = vrot.lane.b32.xlu1 %v5603_v15, %s5002_s26 }
 0x438   : > { %2854 = vrot.lane.b32.xlu0 %v5595_v42, %s6212_s27 }
 0x439   : > { %2856 = vrot.lane.b32.xlu1 %v5597_v36, %s6212_s27 }
 0x43c   : > { %2858 = vrot.lane.b32.xlu0 %v5599_v51, %s6212_s27 }
 0x43d   : > { %2860 = vrot.lane.b32.xlu1 %v5603_v15, %s6212_s27 }
 0x440   : > { %2977 = vrot.lane.b32.xlu0 %v5595_v42, %s6208_s5 }
 0x441   : > { %2979 = vrot.lane.b32.xlu1 %v5597_v36, %s6208_s5 }
 0x444   : > { %2981 = vrot.lane.b32.xlu0 %v5599_v51, %s6208_s5 }
 0x445   : > { %2983 = vrot.lane.b32.xlu1 %v5603_v15, %s6208_s5 }
 0x448   : > { %3100 = vrot.lane.b32.xlu0 %v5595_v42, %s6210_s28 }
 0x449   : > { %3102 = vrot.lane.b32.xlu1 %v5597_v36, %s6210_s28 }
 0x44c   : > { %3104 = vrot.lane.b32.xlu0 %v5599_v51, %s6210_s28 }
 0x44d   : > { %3106 = vrot.lane.b32.xlu1 %v5603_v15, %s6210_s28 }
 0x450   : > { %3244 = vperm.xlu0 %4984, %v3239_v57  }
 0x451   : > { %3249 = vperm.xlu1 %4985, %v3240_v58  }
 0x454   : > { %3274 = vperm.xlu0 %4984, %v3269_v3  }
 0x455   : > { %3279 = vperm.xlu1 %4985, %v3270_v4  }
 0x458   : > { %3254 = vperm.xlu0 %4984, %v3241_v10  }
 0x459   : > { %3284 = vperm.xlu1 %4985, %v3271_v16   ;;  %v4672_v16 = vld [vmem:[%s6196_s11 + $0x4] sm:$0xf] }
 0x482   : > { %v2163_v17 = vpop.permute.xlu0 %2162 }
 0x483   : > { %v2165_v47 = vpop.permute.xlu1 %2164 }
 0x484   : > { %v2172_v19 = vsel %vm779_vm2, %v2163_v17, %v2165_v47 }
 0x485   : > { %v2175_v21 = vmul.f32 %v2172_v19, %v5244_v61 }
 0x486   : > { %v2167_v46 = vpop.permute.xlu0 %2166 }
 0x487   : > { %v2179_v28 = vpack.c.bf16 %v2175_v21, %v2175_v21  ;;  %v2171_v33 = vsel %vm779_vm2, %v2165_v47, %v2167_v46  ;;  %v2169_v63 = vpop.permute.xlu1 %2168 }
 0x488   : > { %v2176_v7 = vmul.f32 %v2171_v33, %v5247_v62  ;;  %v2170_v11 = vsel %vm779_vm2, %v2167_v46, %v2169_v63  ;;  %v2173_v56 = vsel %vm779_vm2, %v2169_v63, %v2163_v17 }
 0x489   : > { %v2174_v1 = vmul.f32 %v2173_v56, %v5260_v8  ;;  %v2177_v26 = vmul.f32 %v2170_v11, %v5263_v9  ;;  %4673 = vmatprep.subr.msk.bf16.mxu0 %vm627_vm0, %v2179_v28 }
 0x48a   : > { %v2180_v44 = vpack.c.bf16 %v2176_v7, %v2176_v7  ;;  %v2142_v14 = vpop.permute.xlu0 %2141 }
 0x48b   : > { %v2178_v60 = vpack.c.bf16 %v2174_v1, %v2174_v1  ;;  %v2181_v12 = vpack.c.bf16 %v2177_v26, %v2177_v26  ;;  %v2144_v50 = vpop.permute.xlu1 %2143 }
 0x48c   : > { %v2151_v57 = vsel %vm736_vm3, %v2142_v14, %v2144_v50  ;;  %v2194_v58 = vsel %vm627_vm0, %v2180_v44, 0 }
 0x48d   : > { %v2154_v3 = vmul.f32 %v2151_v57, %v5274_v20  ;;  %4675 = vmatprep.subr.msk.bf16.mxu1 %vm627_vm0, %v2181_v12  ;;  %v2188_v4 = vsel %vm627_vm0, %v2178_v60, 0 }
 0x48e   : > { %v2146_v10 = vpop.permute.xlu0 %2145  ;;  %2200 = vmatpush1.bf16.msra.mxu0 %v2188_v4  ;;  %2241 = vmatpush1.bf16.msra.mxu1 %v2194_v58 }
 0x48f   : > { %v2158_v17 = vpack.c.bf16 %v2154_v3, %v2154_v3  ;;  %v2150_v47 = vsel %vm736_vm3, %v2144_v50, %v2146_v10  ;;  %v2148_v19 = vpop.permute.xlu1 %2147 }
 0x490   : > { %v2155_v21 = vmul.f32 %v2150_v47, %v5280_v24  ;;  %v2149_v46 = vsel %vm736_vm3, %v2146_v10, %v2148_v19  ;;  %v2152_v28 = vsel %vm736_vm3, %v2148_v19, %v2142_v14 }
 0x491   : > { %v2153_v33 = vmul.f32 %v2152_v28, %v5287_v31  ;;  %v2156_v63 = vmul.f32 %v2149_v46, %v5290_v32  ;;  %4674 = vmatmul.mubr.msk.bf16.vlgmr.msra.gmra.mrb[12].mxu0 %vm623_vm1, %v4672_v16  ;;  %4676 = vmatmul.mubr.msk.bf16.vlgmr.msra.gmra.mrb[12].mxu1 %vm623_vm1, %v4672_v16  ;;  %v2161_v46 = vld [vmem:[%s6196_s11] sm:$0xf] }
 0x492   : > { %v2159_v7 = vpack.c.bf16 %v2155_v21, %v2155_v21  ;;  %4677 = vmatprep.subr.msk.bf16.mxu0 %vm627_vm0, %v2158_v17  ;;  %v2379_v11 = vpop.permute.xlu0 %2378  ;;  %2328 = vmatprep.mubr.bf16.mxu0 %v6220_v29 }
 0x493   : > { %v2157_v56 = vpack.c.bf16 %v2153_v33, %v2153_v33  ;;  %v2160_v1 = vpack.c.bf16 %v2156_v63, %v2156_v63  ;;  %v2381_v26 = vpop.permute.xlu1 %2380  ;;  %2369 = vmatprep.mubr.bf16.mxu1 %v6220_v29 }
 0x494   : > { %v2388_v44 = vsel %vm1017_vm4, %v2379_v11, %v2381_v26  ;;  %v2291_v14 = vsel %vm627_vm0, %v2159_v7, 0 }
 0x495   : > { %v2391_v60 = vmul.f32 %v2388_v44, %v5308_v45  ;;  %4679 = vmatprep.subr.msk.bf16.mxu1 %vm627_vm0, %v2160_v1  ;;  %v2285_v12 = vsel %vm627_vm0, %v2157_v56, 0 }
 0x496   : > { %v2383_v50 = vpop.permute.xlu0 %2382  ;;  %2297 = vmatpush1.bf16.msra.mxu0 %v2285_v12  ;;  %2338 = vmatpush1.bf16.msra.mxu1 %v2291_v14 }
 0x497   : > { %v2395_v57 = vpack.c.bf16 %v2391_v60, %v2391_v60  ;;  %v2387_v58 = vsel %vm1017_vm4, %v2381_v26, %v2383_v50  ;;  %v2385_v3 = vpop.permute.xlu1 %2384 }
 0x498   : > { %v2392_v4 = vmul.f32 %v2387_v58, %v5317_v52  ;;  %v2386_v10 = vsel %vm1017_vm4, %v2383_v50, %v2385_v3  ;;  %v2389_v16 = vsel %vm1017_vm4, %v2385_v3, %v2379_v11 }
 0x499   : > { %v2390_v17 = vmul.f32 %v2389_v16, %v5326_v2  ;;  %v2393_v47 = vmul.f32 %v2386_v10, %v5333_v6  ;;  %4682 = vmatprep.subr.msk.bf16.mxu0 %vm627_vm0, %v2395_v57 }
 0x49a   : > { %v2396_v19 = vpack.c.bf16 %v2392_v4, %v2392_v4  ;;  %v2502_v21 = vpop.permute.xlu0 %2501 }
 0x49b   : > { %v2394_v28 = vpack.c.bf16 %v2390_v17, %v2390_v17  ;;  %v2397_v33 = vpack.c.bf16 %v2393_v47, %v2393_v47  ;;  %v2504_v63 = vpop.permute.xlu1 %2503 }
 0x49c   : > { %v2511_v7 = vsel %vm1162_vm5, %v2502_v21, %v2504_v63  ;;  %v2410_v11 = vsel %vm627_vm0, %v2396_v19, 0  ;;  %v4681_v19 = vld [vmem:[%s6196_s11 + $0x8] sm:$0xf] }
 0x49d   : > { %v2514_v56 = vmul.f32 %v2511_v7, %v5348_v23  ;;  %4678 = vmatmul.mubr.msk.bf16.vlgmr.msra.gmra.mrb[12].mxu0 %vm623_vm1, %v2161_v46  ;;  %4680 = vmatmul.mubr.msk.bf16.vlgmr.msra.gmra.mrb[12].mxu1 %vm623_vm1, %v2161_v46  ;;  %v2404_v1 = vsel %vm627_vm0, %v2394_v28, 0  ;;  %v2625_v28 = vpack.c.bf16 %v5597_v36, %v5597_v36 }
 0x49e   : > { %4684 = vmatprep.subr.msk.bf16.mxu1 %vm627_vm0, %v2397_v33  ;;  %v2506_v26 = vpop.permute.xlu0 %2505  ;;  %2416 = vmatpush1.bf16.msra.mxu0 %v2404_v1  ;;  %v2627_v33 = vpack.c.bf16 %v5603_v15, %v5603_v15  ;;  %v2624_v15 = vpack.c.bf16 %v5595_v42, %v5595_v42 }
 0x49f   : > { %v2518_v44 = vpack.c.bf16 %v2514_v56, %v2514_v56  ;;  %v2510_v14 = vsel %vm1162_vm5, %v2504_v63, %v2506_v26  ;;  %2457 = vmatpush1.bf16.msra.mxu1 %v2410_v11  ;;  %v2508_v60 = vpop.permute.xlu1 %2507  ;;  %2447 = vmatprep.mubr.bf16.mxu0 %v6220_v29 }
 0x4a0   : > { %v2509_v12 = vsel %vm1162_vm5, %v2506_v26, %v2508_v60  ;;  %v2512_v50 = vsel %vm1162_vm5, %v2508_v60, %v2502_v21  ;;  %2488 = vmatprep.mubr.bf16.mxu1 %v6220_v29  ;;  %v2515_v57 = vmul.f32 %v2510_v14, %v5354_v27  ;;  %v2626_v14 = vpack.c.bf16 %v5599_v51, %v5599_v51  ;;  %v4686_v60 = vld [vmem:[%s6196_s11 + $0xc] sm:$0xf] }
 0x4a1   : > { %v2513_v58 = vmul.f32 %v2512_v50, %v5363_v37  ;;  %v2516_v3 = vmul.f32 %v2509_v12, %v5366_v38  ;;  %4687 = vmatprep.subr.msk.bf16.mxu0 %vm627_vm0, %v2518_v44  ;;  %v2634_v12 = vsel %vm627_vm0, %v2624_v15, 0 }
 0x4a2   : > { %v2519_v10 = vpack.c.bf16 %v2515_v57, %v2515_v57  ;;  %v2732_v17 = vpop.permute.xlu0 %2731 }
 0x4a3   : > { %v2520_v4 = vpack.c.bf16 %v2516_v3, %v2516_v3  ;;  %v2517_v16 = vpack.c.bf16 %v2513_v58, %v2513_v58  ;;  %v2734_v47 = vpop.permute.xlu1 %2733  ;;  %v2640_v58 = vsel %vm627_vm0, %v2626_v14, 0 }
 0x4a4   : > { %v2533_v46 = vsel %vm627_vm0, %v2519_v10, 0  ;;  %v2741_v50 = vsel %vm1414_vm6, %v2732_v17, %v2734_v47 }
 0x4a5   : > { %4689 = vmatprep.subr.msk.bf16.mxu1 %vm627_vm0, %v2520_v4  ;;  %v2527_v21 = vsel %vm627_vm0, %v2517_v16, 0  ;;  %v2743_v10 = vmul.f32 %v2741_v50, %v5422_v34 }
 0x4a6   : > { %v2736_v63 = vpop.permute.xlu0 %2735 }
 0x4a7   : > { %v2738_v7 = vpop.permute.xlu1 %2737  ;;  %v2740_v11 = vsel %vm1414_vm6, %v2734_v47, %v2736_v63 }
 0x4a8   : > { %v2742_v36 = vsel %vm1414_vm6, %v2738_v7, %v2732_v17  ;;  %v2744_v56 = vmul.f32 %v2740_v11, %v5403_v48  ;;  %v2739_v51 = vsel %vm1414_vm6, %v2736_v63, %v2738_v7  ;;  %v4691_v7 = vld [vmem:[%s6196_s11 + $0x10] sm:$0xf] }
 0x4a9   : > { %4683 = vmatmul.mubr.msk.bf16.vlgmr.msra.gmra.mrb[12].mxu0 %vm623_vm1, %v4681_v19  ;;  %4685 = vmatmul.mubr.msk.bf16.vlgmr.msra.gmra.mrb[12].mxu1 %vm623_vm1, %v4681_v19  ;;  %v2746_v1 = vmul.f32 %v2742_v36, %v5406_v18  ;;  %v2745_v16 = vmul.f32 %v2739_v51, %v5426_v39  ;;  %v2747_v19 = vpack.c.bf16 %v2743_v10, %v2743_v10 }
 0x4aa   : > { %2539 = vmatpush1.bf16.msra.mxu0 %v2527_v21  ;;  %2580 = vmatpush1.bf16.msra.mxu1 %v2533_v46  ;;  %v2855_v26 = vpop.permute.xlu0 %2854  ;;  %v2748_v57 = vpack.c.bf16 %v2744_v56, %v2744_v56 }
 0x4ab   : > { %4692 = vmatprep.subr.msk.bf16.mxu0 %vm627_vm0, %v2625_v28  ;;  %4694 = vmatprep.subr.msk.bf16.mxu1 %vm627_vm0, %v2627_v33  ;;  %v2857_v44 = vpop.permute.xlu1 %2856  ;;  %v2750_v42 = vpack.c.bf16 %v2746_v1, %v2746_v1  ;;  %v2749_v21 = vpack.c.bf16 %v2745_v16, %v2745_v16  ;;  %v2757_v11 = vsel %vm627_vm0, %v2747_v19, 0  ;;  %v4696_v16 = vld [vmem:[%s6196_s11 + $0x14] sm:$0xf] }
 0x4ac   : > { %2570 = vmatprep.mubr.bf16.mxu0 %v6220_v29  ;;  %2611 = vmatprep.mubr.bf16.mxu1 %v6220_v29  ;;  %v2864_v36 = vsel %vm1559_vm7, %v2855_v26, %v2857_v44 }
 0x4ad   : > { %v2763_v1 = vsel %vm627_vm0, %v2749_v21, 0 }
 0x4ae   : > { %v2859_v3 = vpop.permute.xlu0 %2858 }
 0x4af   : > { %v2861_v4 = vpop.permute.xlu1 %2860  ;;  %v2863_v17 = vsel %vm1559_vm7, %v2857_v44, %v2859_v3 }
 0x4b0   : > { %v2865_v47 = vsel %vm1559_vm7, %v2861_v4, %v2855_v26  ;;  %v2867_v46 = vmul.f32 %v2863_v17, %v5446_v53  ;;  %v2862_v14 = vsel %vm1559_vm7, %v2859_v3, %v2861_v4  ;;  %v2866_v26 = vmul.f32 %v2864_v36, %v5461_v13 }
 0x4b1   : > { %v2869_v28 = vmul.f32 %v2865_v47, %v5449_v54  ;;  %v2868_v44 = vmul.f32 %v2862_v14, %v5470_v25 }
 0x4b2   : > { %v2978_v33 = vpop.permute.xlu0 %2977  ;;  %v2871_v15 = vpack.c.bf16 %v2867_v46, %v2867_v46 }
 0x4b3   : > { %v2980_v63 = vpop.permute.xlu1 %2979  ;;  %v2873_v56 = vpack.c.bf16 %v2869_v28, %v2869_v28 }
 0x4b4   : > { %v2987_v47 = vsel %vm1704_vm8, %v2978_v33, %v2980_v63 }
 0x4b5   : > { %4688 = vmatmul.mubr.msk.bf16.vlgmr.msra.gmra.mrb[12].mxu0 %vm623_vm1, %v4686_v60  ;;  %4690 = vmatmul.mubr.msk.bf16.vlgmr.msra.gmra.mrb[12].mxu1 %vm623_vm1, %v4686_v60 }
 0x4b6   : > { %2646 = vmatpush1.bf16.msra.mxu0 %v2634_v12  ;;  %2687 = vmatpush1.bf16.msra.mxu1 %v2640_v58  ;;  %v2982_v60 = vpop.permute.xlu0 %2981  ;;  %v2872_v58 = vpack.c.bf16 %v2868_v44, %v2868_v44  ;;  %v4701_v44 = vld [vmem:[%s6196_s11 + $0x18] sm:$0xf] }
 0x4b7   : > { %4697 = vmatprep.subr.msk.bf16.mxu0 %vm627_vm0, %v2748_v57  ;;  %4699 = vmatprep.subr.msk.bf16.mxu1 %vm627_vm0, %v2750_v42  ;;  %v2984_v12 = vpop.permute.xlu1 %2983  ;;  %v2986_v50 = vsel %vm1704_vm8, %v2980_v63, %v2982_v60  ;;  %v2870_v42 = vpack.c.bf16 %v2866_v26, %v2866_v26 }
 0x4b8   : > { %2677 = vmatprep.mubr.bf16.mxu0 %v6220_v29  ;;  %2718 = vmatprep.mubr.bf16.mxu1 %v6220_v29  ;;  %v2988_v57 = vsel %vm1704_vm8, %v2984_v12, %v2978_v33  ;;  %v2990_v51 = vmul.f32 %v2986_v50, %v5484_v35  ;;  %v2886_v46 = vsel %vm627_vm0, %v2872_v58, 0  ;;  %v2985_v28 = vsel %vm1704_vm8, %v2982_v60, %v2984_v12  ;;  %v3228_v50 = vld [vmem:[#allocation2 + $0x8] sm:$0xff] }
 0x4b9   : > { %v2992_v3 = vmul.f32 %v2988_v57, %v5490_v40  ;;  %v2880_v17 = vsel %vm627_vm0, %v2870_v42, 0  ;;  %v2989_v33 = vmul.f32 %v2987_v47, %v5500_v59  ;;  %v2991_v63 = vmul.f32 %v2985_v28, %v5507_v5  ;;  %v3230_v42 = vld [vmem:[#allocation2 + $0x18] sm:$0xff] }
 0x4ba   : > { %v3101_v4 = vpop.permute.xlu0 %3100  ;;  %v2994_v19 = vpack.c.bf16 %v2990_v51, %v2990_v51 }
 0x4bb   : > { %v3103_v10 = vpop.permute.xlu1 %3102  ;;  %v2996_v21 = vpack.c.bf16 %v2992_v3, %v2992_v3  ;;  %v2995_v60 = vpack.c.bf16 %v2991_v63, %v2991_v63 }
 0x4bc   : > { %v3110_v57 = vsel %vm1849_vm9, %v3101_v4, %v3103_v10 }
 0x4bd   : > { %v3112_v28 = vmul.f32 %v3110_v57, %v5539_v43 }
 0x4c1   : > { %4693 = vmatmul.mubr.msk.bf16.vlgmr.msra.gmra.mrb[12].mxu0 %vm623_vm1, %v4691_v7  ;;  %4695 = vmatmul.mubr.msk.bf16.vlgmr.msra.gmra.mrb[12].mxu1 %vm623_vm1, %v4691_v7  ;;  %v3105_v7 = vpop.permute.xlu0 %3104 }
 0x4c2   : > { %2769 = vmatpush1.bf16.msra.mxu0 %v2757_v11  ;;  %2810 = vmatpush1.bf16.msra.mxu1 %v2763_v1  ;;  %v3107_v11 = vpop.permute.xlu1 %3106  ;;  %v3109_v36 = vsel %vm1849_vm9, %v3103_v10, %v3105_v7 }
 0x4c3   : > { %4702 = vmatprep.subr.msk.bf16.mxu0 %vm627_vm0, %v2871_v15  ;;  %4704 = vmatprep.subr.msk.bf16.mxu1 %vm627_vm0, %v2873_v56  ;;  %v3111_v15 = vsel %vm1849_vm9, %v3107_v11, %v3101_v4  ;;  %v2993_v56 = vpack.c.bf16 %v2989_v33, %v2989_v33  ;;  %v3113_v12 = vmul.f32 %v3109_v36, %v5522_v22 }
 0x4c4   : > { %2800 = vmatprep.mubr.bf16.mxu0 %v6220_v29  ;;  %2841 = vmatprep.mubr.bf16.mxu1 %v6220_v29  ;;  %v3115_v26 = vmul.f32 %v3111_v15, %v5529_v30  ;;  %v3108_v3 = vsel %vm1849_vm9, %v3105_v7, %v3107_v11  ;;  %v3116_v15 = vpack.c.bf16 %v3112_v28, %v3112_v28 }
 0x4c5   : > { %v3003_v58 = vsel %vm627_vm0, %v2993_v56, 0  ;;  %v3117_v51 = vpack.c.bf16 %v3113_v12, %v3113_v12  ;;  %v3114_v7 = vmul.f32 %v3108_v3, %v5546_v49 }
 0x4c6   : > { %v3126_v57 = vsel %vm627_vm0, %v3116_v15, 0 }
 0x4cd   : > { %4698 = vmatmul.mubr.msk.bf16.vlgmr.msra.gmra.mrb[12].mxu0 %vm623_vm1, %v4696_v16  ;;  %4700 = vmatmul.mubr.msk.bf16.vlgmr.msra.gmra.mrb[12].mxu1 %vm623_vm1, %v4696_v16  ;;  %v3119_v16 = vpack.c.bf16 %v3115_v26, %v3115_v26  ;;  %v3227_v26 = vld [vmem:[#allocation2] sm:$0xff] }
 0x4ce   : > { %2892 = vmatpush1.bf16.msra.mxu0 %v2880_v17  ;;  %2933 = vmatpush1.bf16.msra.mxu1 %v2886_v46  ;;  %v3009_v17 = vsel %vm627_vm0, %v2995_v60, 0 }
 0x4cf   : > { %4707 = vmatprep.subr.msk.bf16.mxu0 %vm627_vm0, %v2994_v19  ;;  %4709 = vmatprep.subr.msk.bf16.mxu1 %vm627_vm0, %v2996_v21  ;;  %v3245_v1 = vpop.permute.xlu0 %3244 }
 0x4d0   : > { %2964 = vmatprep.mubr.bf16.mxu1 %v6220_v29  ;;  %2923 = vmatprep.mubr.bf16.mxu0 %v6220_v29  ;;  %v3250_v14 = vpop.permute.xlu1 %3249  ;;  %v3258_v47 = vmul.f32 %v3245_v1, %v3228_v50  ;;  %v3260_v4 = vmul.f32 %v3245_v1, %v3230_v42  ;;  %v3229_v50 = vld [vmem:[#allocation2 + $0x10] sm:$0xff]  ;;  %v3257_v42 = vmul.f32 %v3245_v1, %v3227_v26 }
 0x4d1   : > { %v3262_v10 = vmul.f32 %v3250_v14, %v5581_v41  ;;  %v3264_v46 = vmul.f32 %v3250_v14, %v5585_v0  ;;  %v3118_v41 = vpack.c.bf16 %v3114_v7, %v3114_v7 }
 0x4d3   : > { %v3275_v19 = vpop.permute.xlu0 %3274 }
 0x4d4   : > { %v3280_v21 = vpop.permute.xlu1 %3279  ;;  %v3288_v11 = vadd.f32 %v3275_v19, %v3258_v47  ;;  %v3290_v33 = vadd.f32 %v3275_v19, %v3260_v4  ;;  %v6222_v4 = vld [vmem:[#allocation4_spill] sm:$0xff] }
 0x4d5   : > { %v3292_v63 = vadd.f32 %v3280_v21, %v3262_v10  ;;  %v3294_v36 = vadd.f32 %v3280_v21, %v3264_v46  ;;  %v3263_v10 = vmul.f32 %v3250_v14, %v6222_v4  ;;  %v3287_v46 = vadd.f32 %v3275_v19, %v3257_v42 }
 0x4d6   : > { %v3300_v56 = vmax.f32 %v3288_v11, 0.0  ;;  %v3302_v60 = vmax.f32 %v3290_v33, 0.0 }
 0x4d7   : > { %v3304_v0 = vmax.f32 %v3292_v63, 0.0  ;;  %v3306_v12 = vmax.f32 %v3294_v36, 0.0  ;;  %v3293_v11 = vadd.f32 %v3280_v21, %v3263_v10  ;;  %v3299_v33 = vmax.f32 %v3287_v46, 0.0 }
 0x4d9   : > { %4703 = vmatmul.mubr.msk.bf16.vlgmr.msra.gmra.mrb[12].mxu0 %vm623_vm1, %v4701_v44  ;;  %4705 = vmatmul.mubr.msk.bf16.vlgmr.msra.gmra.mrb[12].mxu1 %vm623_vm1, %v4701_v44  ;;  %v4706_v44 = vld [vmem:[%s6196_s11 + $0x1c] sm:$0xf]  ;;  %v3315_v3 = vpack.c.bf16 %v3306_v12, %v3302_v60 }
 0x4da   : > { %3015 = vmatpush1.bf16.msra.mxu0 %v3003_v58  ;;  %3056 = vmatpush1.bf16.msra.mxu1 %v3009_v17  ;;  %v3132_v58 = vsel %vm627_vm0, %v3118_v41, 0  ;;  %v6221_v17 = vld [vmem:[#allocation3_spill] sm:$0xff] }
 0x4db   : > { %4712 = vmatprep.subr.msk.bf16.mxu0 %vm627_vm0, %v3117_v51  ;;  %4714 = vmatprep.subr.msk.bf16.mxu1 %vm627_vm0, %v3119_v16  ;;  %v3313_v51 = vpack.c.bf16 %v3304_v0, %v3300_v56  ;;  %v3259_v16 = vmul.f32 %v3245_v1, %v3229_v50  ;;  %v3261_v47 = vmul.f32 %v3250_v14, %v6221_v17  ;;  %v3305_v1 = vmax.f32 %v3293_v11, 0.0  ;;  %v4711_v14 = vld [vmem:[%s6196_s11 + $0x20] sm:$0xf] }
 0x4dc   : > { %3046 = vmatprep.mubr.bf16.mxu0 %v6220_v29  ;;  %3087 = vmatprep.mubr.bf16.mxu1 %v6220_v29 }
 0x4dd   : > { %v3289_v28 = vadd.f32 %v3275_v19, %v3259_v16  ;;  %v3291_v7 = vadd.f32 %v3280_v21, %v3261_v47  ;;  %v3255_v19 = vpop.permute.xlu0 %3254  ;;  %v3285_v21 = vpop.permute.xlu1 %3284 }
 0x4df   : > { %v3301_v63 = vmax.f32 %v3289_v28, 0.0  ;;  %v3303_v36 = vmax.f32 %v3291_v7, 0.0 }
 0x4e1   : > { %v3312_v15 = vpack.c.bf16 %v3303_v36, %v3299_v33  ;;  %v3314_v41 = vpack.c.bf16 %v3305_v1, %v3301_v63 }
 0x4e5   : > { %4708 = vmatmul.mubr.msk.bf16.vlgmr.msra.gmra.mrb[12].mxu0 %vm623_vm1, %v4706_v44  ;;  %4710 = vmatmul.mubr.msk.bf16.vlgmr.msra.gmra.mrb[12].mxu1 %vm623_vm1, %v4706_v44 }
 0x4e6   : > { %3138 = vmatpush1.bf16.msra.mxu0 %v3126_v57  ;;  %3179 = vmatpush1.bf16.msra.mxu1 %v3132_v58 }
 0x4e7   : > { %3336 = vmatprep.subr.bf16.mxu0 %v3313_v51  ;;  %3377 = vmatprep.subr.bf16.mxu1 %v3315_v3 }
 0x4e8   : > { %3169 = vmatprep.mubr.bf16.mxu0 %v6220_v29  ;;  %3210 = vmatprep.mubr.bf16.mxu1 %v6220_v29 }
 0x4f1   : > { %4713 = vmatmul.mubr.msk.bf16.vlgmr.msra.gmra.mrb[12].mxu0 %vm623_vm1, %v4711_v14  ;;  %4715 = vmatmul.mubr.msk.bf16.vlgmr.msra.gmra.mrb[12].mxu1 %vm623_vm1, %v4711_v14 }
 0x4f2   : > { %3337 = vmatpush1.bf16.msra.mxu0 %v3312_v15  ;;  %3378 = vmatpush1.bf16.msra.mxu1 %v3314_v41 }
 0x4f3   : > { %3368 = vmatprep.mubr.bf16.mxu0 %v6220_v29  ;;  %3409 = vmatprep.mubr.bf16.mxu1 %v6220_v29 }
 0x5c4   : > { %v3171_v56 = vpop.f32.mrb[12].mxu0  ;;  %v3212_v0 = vpop.f32.mrb[12].mxu1 }
 0x5c5   : > { %3223 = vst [vmem:[#allocation2 + $0x40] sm:$0xff] %v3171_v56  ;;  %3225 = vst [vmem:[#allocation2 + $0x50] sm:$0xff] %v3212_v0  ;;  %v3173_v60 = vpop.f32.mrb[13].mxu0  ;;  %v3214_v12 = vpop.f32.mrb[13].mxu1  ;;  %v3265_v26 = vmul.f32 %v3255_v19, %v3171_v56  ;;  %v3267_v44 = vmul.f32 %v3255_v19, %v3212_v0 }
 0x5c6   : > { %3224 = vst [vmem:[#allocation2 + $0x48] sm:$0xff] %v3173_v60  ;;  %3226 = vst [vmem:[#allocation2 + $0x58] sm:$0xff] %v3214_v12  ;;  %v3175_v50 = vpop.f32.mrb[14].mxu0  ;;  %v3216_v57 = vpop.f32.mrb[14].mxu1  ;;  %v3266_v42 = vmul.f32 %v3255_v19, %v3173_v60  ;;  %v3268_v58 = vmul.f32 %v3255_v19, %v3214_v12 }
 0x5c7   : > { %v3176_v51 = vpop.f32.mrb[15].mxu0  ;;  %v3217_v3 = vpop.f32.mrb[15].mxu1  ;;  %v3295_v16 = vadd.f32 %v3285_v21, %v3265_v26  ;;  %v3297_v17 = vadd.f32 %v3285_v21, %v3267_v44  ;;  %v3311_v26 = vld [vmem:[%s6199_s14] sm:$0xf] }
 0x5c8   : > { %v3296_v47 = vadd.f32 %v3285_v21, %v3266_v42  ;;  %v3298_v4 = vadd.f32 %v3285_v21, %v3268_v58 }
 0x5c9   : > { %v3307_v10 = vmax.f32 %v3295_v16, 0.0  ;;  %v3309_v46 = vmax.f32 %v3297_v17, 0.0 }
 0x5ca   : > { %v3308_v28 = vmax.f32 %v3296_v47, 0.0  ;;  %v3310_v7 = vmax.f32 %v3298_v4, 0.0 }
 0x5cb   : > { %v3316_v11 = vpack.c.bf16 %v3307_v10, %v3307_v10  ;;  %v3318_v33 = vpack.c.bf16 %v3309_v46, %v3309_v46 }
 0x5cc   : > { %v4512_v63 = vld [vmem:[#allocation2 + $0x40] sm:$0xf]  ;;  %v4531_v36 = vld [vmem:[#allocation2 + $0x50] sm:$0xf]  ;;  %v3317_v1 = vpack.c.bf16 %v3308_v28, %v3308_v28  ;;  %v3319_v14 = vpack.c.bf16 %v3310_v7, %v3310_v7 }
 0x5cd   : > { %v4516_v15 = vrot.slane %v4512_v63, 4  ;;  %v4535_v41 = vrot.slane %v4531_v36, 4  ;;  %v4513_v19 = vld [vmem:[#allocation2 + $0x48] sm:$0xf]  ;;  %v4532_v56 = vld [vmem:[#allocation2 + $0x58] sm:$0xf] }
 0x5ce   : > { %v4517_v0 = vrot.slane %v4513_v19, 4  ;;  %v4536_v21 = vrot.slane %v4532_v56, 4  ;;  %4716 = vmatprep.subr.msk.bf16.mxu0 %vm627_vm0, %v3317_v1  ;;  %4718 = vmatprep.subr.msk.bf16.mxu1 %vm627_vm0, %v3319_v14  ;;  %v3325_v60 = vsel %vm627_vm0, %v3316_v11, 0  ;;  %v3331_v12 = vsel %vm627_vm0, %v3318_v33, 0 }
 0x5cf   : > { %4520 = vst [vmem:[%s5120_s20] sm:$0xf0] %v4516_v15  ;;  %3339 = vmatpush1.bf16.msra.mxu0 %v3325_v60  ;;  %3380 = vmatpush1.bf16.msra.mxu1 %v3331_v12  ;;  %4766 = vst [vmem:[%s5120_s20 + $0x20] sm:$0xf0] %v4535_v41 }
 0x5d0   : > { %4521 = vst [vmem:[%s5120_s20 + $0x8] sm:$0xf0] %v4517_v0  ;;  %4767 = vst [vmem:[%s5120_s20 + $0x28] sm:$0xf0] %v4536_v21 }
 0x5d2   : > { %4717 = vmatmul.mubr.msk.bf16.vlgmr.msra.gmra.mrb[16].mxu0 %vm3320_vm11, %v3311_v26  ;;  %4719 = vmatmul.mubr.msk.bf16.vlgmr.msra.gmra.mrb[16].mxu1 %vm3320_vm11, %v3311_v26 }
 0x5d3   : > { %3512 = vmatprep.mubr.bf16.mxu0 %v6220_v29  ;;  %3553 = vmatprep.mubr.bf16.mxu1 %v6220_v29 }
 0x6a5   : > { %v3370_v44 = vpop.f32.mrb[16].mxu0  ;;  %v3411_v50 = vpop.f32.mrb[16].mxu1 }
 0x6a6   : > { %v5905_v57 = vmax.f32 %v3370_v44, 0.0  ;;  %v3372_v42 = vpop.f32.mrb[17].mxu0  ;;  %v3413_v58 = vpop.f32.mrb[17].mxu1  ;;  %v5915_v10 = vmax.f32 %v3411_v50, 0.0 }
 0x6a7   : > { %v5907_v51 = vmax.f32 %v3372_v42, 0.0  ;;  %v3374_v3 = vpop.f32.mrb[18].mxu0  ;;  %v3415_v16 = vpop.f32.mrb[18].mxu1  ;;  %v5909_v17 = vmax.f32 %v3413_v58, 0.0 }
 0x6a8   : > { %v3416_v47 = vpop.f32.mrb[19].mxu1  ;;  %3443 = vrot.lane.b32.xlu0 %v5905_v57, %s4998_s23  ;;  %v3375_v4 = vpop.f32.mrb[19].mxu0 }
 0x6a9   : > { %3445 = vrot.lane.b32.xlu1 %v5907_v51, %s4998_s23 }
 0x6ac   : > { %3449 = vrot.lane.b32.xlu0 %v5909_v17, %s4998_s23 }
 0x6ad   : > { %3447 = vrot.lane.b32.xlu1 %v5915_v10, %s4998_s23  ;;  %s6223_s23 = smov 113  }
 0x6b0   : > { %3422 = vrot.lane.b32.xlu0 %v5905_v57, %s4999_s15 }
 0x6b1   : > { %3424 = vrot.lane.b32.xlu1 %v5907_v51, %s4999_s15 }
 0x6b4   : > { %3428 = vrot.lane.b32.xlu0 %v5909_v17, %s4999_s15 }
 0x6b5   : > { %3426 = vrot.lane.b32.xlu1 %v5915_v10, %s4999_s15  ;;  %s6224_s15 = smov 112  }
 0x6b8   : > { %3659 = vrot.lane.b32.xlu0 %v5905_v57, %s5000_s24 }
 0x6b9   : > { %3661 = vrot.lane.b32.xlu1 %v5907_v51, %s5000_s24 }
 0x6bc   : > { %3665 = vrot.lane.b32.xlu0 %v5909_v17, %s5000_s24 }
 0x6bd   : > { %3663 = vrot.lane.b32.xlu1 %v5915_v10, %s5000_s24  ;;  %s6225_s24 = smov 111  }
 0x6c0   : > { %3782 = vrot.lane.b32.xlu0 %v5905_v57, %s5001_s25 }
 0x6c1   : > { %3784 = vrot.lane.b32.xlu1 %v5907_v51, %s5001_s25 }
 0x6c4   : > { %3788 = vrot.lane.b32.xlu0 %v5909_v17, %s5001_s25 }
 0x6c5   : > { %3786 = vrot.lane.b32.xlu1 %v5915_v10, %s5001_s25 }
 0x6c8   : > { %4012 = vrot.lane.b32.xlu0 %v5905_v57, %s5002_s26 }
 0x6c9   : > { %4014 = vrot.lane.b32.xlu1 %v5907_v51, %s5002_s26 }
 0x6cc   : > { %4016 = vrot.lane.b32.xlu0 %v5915_v10, %s5002_s26 }
 0x6cd   : > { %4018 = vrot.lane.b32.xlu1 %v5909_v17, %s5002_s26 }
 0x6d0   : > { %4135 = vrot.lane.b32.xlu0 %v5905_v57, %s6223_s23 }
 0x6d1   : > { %4137 = vrot.lane.b32.xlu1 %v5907_v51, %s6223_s23 }
 0x6d4   : > { %4139 = vrot.lane.b32.xlu0 %v5915_v10, %s6223_s23 }
 0x6d5   : > { %4141 = vrot.lane.b32.xlu1 %v5909_v17, %s6223_s23 }
 0x6d8   : > { %4258 = vrot.lane.b32.xlu0 %v5905_v57, %s6224_s15 }
 0x6d9   : > { %4260 = vrot.lane.b32.xlu1 %v5907_v51, %s6224_s15 }
 0x6dc   : > { %4262 = vrot.lane.b32.xlu0 %v5915_v10, %s6224_s15 }
 0x6dd   : > { %4264 = vrot.lane.b32.xlu1 %v5909_v17, %s6224_s15 }
 0x6e0   : > { %4381 = vrot.lane.b32.xlu0 %v5905_v57, %s6225_s24 }
 0x6e1   : > { %4383 = vrot.lane.b32.xlu1 %v5907_v51, %s6225_s24 }
 0x6e4   : > { %4385 = vrot.lane.b32.xlu0 %v5915_v10, %s6225_s24 }
 0x6e5   : > { %4387 = vrot.lane.b32.xlu1 %v5909_v17, %s6225_s24 }
 0x71a   : > { %v3444_v46 = vpop.permute.xlu0 %3443 }
 0x71b   : > { %v3446_v28 = vpop.permute.xlu1 %3445 }
 0x71c   : > { %v3453_v7 = vsel %vm779_vm2, %v3444_v46, %v3446_v28 }
 0x71d   : > { %v3456_v11 = vmul.f32 %v3453_v7, %v5244_v61 }
 0x71e   : > { %v3450_v33 = vpop.permute.xlu0 %3449 }
 0x71f   : > { %v3460_v63 = vpack.c.bf16 %v3456_v11, %v3456_v11  ;;  %v3454_v36 = vsel %vm779_vm2, %v3450_v33, %v3444_v46  ;;  %v3448_v1 = vpop.permute.xlu1 %3447 }
 0x720   : > { %v3455_v14 = vmul.f32 %v3454_v36, %v5260_v8  ;;  %v3451_v15 = vsel %vm779_vm2, %v3448_v1, %v3450_v33  ;;  %v3452_v41 = vsel %vm779_vm2, %v3446_v28, %v3448_v1 }
 0x721   : > { %v3457_v19 = vmul.f32 %v3452_v41, %v5247_v62  ;;  %v3458_v56 = vmul.f32 %v3451_v15, %v5263_v9  ;;  %4721 = vmatprep.subr.msk.bf16.mxu0 %vm627_vm0, %v3460_v63  ;;  %v4720_v9 = vld [vmem:[%s6201_s16 + $0x4] sm:$0xf] }
 0x722   : > { %v3459_v61 = vpack.c.bf16 %v3455_v14, %v3455_v14  ;;  %v3423_v0 = vpop.permute.xlu0 %3422 }
 0x723   : > { %v3461_v21 = vpack.c.bf16 %v3457_v19, %v3457_v19  ;;  %v3462_v60 = vpack.c.bf16 %v3458_v56, %v3458_v56  ;;  %v3425_v12 = vpop.permute.xlu1 %3424 }
 0x724   : > { %v3432_v8 = vsel %vm736_vm3, %v3423_v0, %v3425_v12  ;;  %v3469_v26 = vsel %vm627_vm0, %v3459_v61, 0 }
 0x725   : > { %v3435_v44 = vmul.f32 %v3432_v8, %v5274_v20  ;;  %3481 = vmatpush1.bf16.msra.mxu0 %v3469_v26  ;;  %4723 = vmatprep.subr.msk.bf16.mxu1 %vm627_vm0, %v3462_v60  ;;  %v3475_v62 = vsel %vm627_vm0, %v3461_v21, 0  ;;  %v3442_v21 = vld [vmem:[%s6201_s16] sm:$0xf] }
 0x726   : > { %v3429_v50 = vpop.permute.xlu0 %3428  ;;  %3522 = vmatpush1.bf16.msra.mxu1 %v3475_v62 }
 0x727   : > { %v3439_v42 = vpack.c.bf16 %v3435_v44, %v3435_v44  ;;  %v3433_v58 = vsel %vm736_vm3, %v3429_v50, %v3423_v0  ;;  %v3427_v3 = vpop.permute.xlu1 %3426 }
 0x728   : > { %v3434_v16 = vmul.f32 %v3433_v58, %v5287_v31  ;;  %v3430_v20 = vsel %vm736_vm3, %v3427_v3, %v3429_v50  ;;  %v3431_v47 = vsel %vm736_vm3, %v3425_v12, %v3427_v3  ;;  %4722 = vmatmul.mubr.msk.bf16.vlgmr.msra.gmra.mrb[20].mxu0 %vm623_vm1, %v4720_v9 }
 0x729   : > { %v3436_v4 = vmul.f32 %v3431_v47, %v5280_v24  ;;  %v3437_v46 = vmul.f32 %v3430_v20, %v5290_v32  ;;  %4724 = vmatmul.mubr.msk.bf16.vlgmr.msra.gmra.mrb[20].mxu1 %vm623_vm1, %v4720_v9  ;;  %4725 = vmatprep.subr.msk.bf16.mxu0 %vm627_vm0, %v3439_v42 }
 0x72a   : > { %v3438_v28 = vpack.c.bf16 %v3434_v16, %v3434_v16  ;;  %v3660_v7 = vpop.permute.xlu0 %3659  ;;  %3609 = vmatprep.mubr.bf16.mxu0 %v6220_v29  ;;  %3650 = vmatprep.mubr.bf16.mxu1 %v6220_v29 }
 0x72b   : > { %v3440_v31 = vpack.c.bf16 %v3436_v4, %v3436_v4  ;;  %v3441_v11 = vpack.c.bf16 %v3437_v46, %v3437_v46  ;;  %v3662_v33 = vpop.permute.xlu1 %3661 }
 0x72c   : > { %v3669_v63 = vsel %vm1017_vm4, %v3660_v7, %v3662_v33  ;;  %v3566_v24 = vsel %vm627_vm0, %v3438_v28, 0 }
 0x72d   : > { %v3672_v32 = vmul.f32 %v3669_v63, %v5308_v45  ;;  %3578 = vmatpush1.bf16.msra.mxu0 %v3566_v24  ;;  %4727 = vmatprep.subr.msk.bf16.mxu1 %vm627_vm0, %v3441_v11  ;;  %v3572_v36 = vsel %vm627_vm0, %v3440_v31, 0 }
 0x72e   : > { %v3666_v1 = vpop.permute.xlu0 %3665  ;;  %3619 = vmatpush1.bf16.msra.mxu1 %v3572_v36 }
 0x72f   : > { %v3676_v14 = vpack.c.bf16 %v3672_v32, %v3672_v32  ;;  %v3670_v15 = vsel %vm1017_vm4, %v3666_v1, %v3660_v7  ;;  %v3664_v41 = vpop.permute.xlu1 %3663 }
 0x730   : > { %v3671_v19 = vmul.f32 %v3670_v15, %v5326_v2  ;;  %v3667_v56 = vsel %vm1017_vm4, %v3664_v41, %v3666_v1  ;;  %v3668_v45 = vsel %vm1017_vm4, %v3662_v33, %v3664_v41  ;;  %v3908_v33 = vpack.c.bf16 %v5909_v17, %v5909_v17  ;;  %v4734_v41 = vld [vmem:[%s6201_s16 + $0xc] sm:$0xf] }
 0x731   : > { %v3673_v61 = vmul.f32 %v3668_v45, %v5317_v52  ;;  %v3674_v0 = vmul.f32 %v3667_v56, %v5333_v6  ;;  %4730 = vmatprep.subr.msk.bf16.mxu0 %vm627_vm0, %v3676_v14  ;;  %v3905_v1 = vpack.c.bf16 %v5905_v57, %v5905_v57 }
 0x732   : > { %v3675_v60 = vpack.c.bf16 %v3671_v19, %v3671_v19  ;;  %v3783_v12 = vpop.permute.xlu0 %3782  ;;  %v3907_v19 = vpack.c.bf16 %v5915_v10, %v5915_v10 }
 0x733   : > { %v3677_v8 = vpack.c.bf16 %v3673_v61, %v3673_v61  ;;  %v3678_v2 = vpack.c.bf16 %v3674_v0, %v3674_v0  ;;  %v3785_v26 = vpop.permute.xlu1 %3784  ;;  %v3915_v45 = vsel %vm627_vm0, %v3905_v1, 0 }
 0x734   : > { %v3792_v44 = vsel %vm1162_vm5, %v3783_v12, %v3785_v26  ;;  %4726 = vmatmul.mubr.msk.bf16.vlgmr.msra.gmra.mrb[20].mxu0 %vm623_vm1, %v3442_v21  ;;  %v3685_v52 = vsel %vm627_vm0, %v3675_v60, 0 }
 0x735   : > { %v3795_v6 = vmul.f32 %v3792_v44, %v5348_v23  ;;  %4728 = vmatmul.mubr.msk.bf16.vlgmr.msra.gmra.mrb[20].mxu1 %vm623_vm1, %v3442_v21  ;;  %3697 = vmatpush1.bf16.msra.mxu0 %v3685_v52  ;;  %v3691_v62 = vsel %vm627_vm0, %v3677_v8, 0 }
 0x736   : > { %4732 = vmatprep.subr.msk.bf16.mxu1 %vm627_vm0, %v3678_v2  ;;  %v3789_v9 = vpop.permute.xlu0 %3788  ;;  %3728 = vmatprep.mubr.bf16.mxu0 %v6220_v29 }
 0x737   : > { %v3799_v50 = vpack.c.bf16 %v3795_v6, %v3795_v6  ;;  %v3793_v42 = vsel %vm1162_vm5, %v3789_v9, %v3783_v12  ;;  %3738 = vmatpush1.bf16.msra.mxu1 %v3691_v62  ;;  %v3787_v58 = vpop.permute.xlu1 %3786  ;;  %3769 = vmatprep.mubr.bf16.mxu1 %v6220_v29 }
 0x738   : > { %v3794_v23 = vmul.f32 %v3793_v42, %v5363_v37  ;;  %v3790_v3 = vsel %vm1162_vm5, %v3787_v58, %v3789_v9  ;;  %v3791_v16 = vsel %vm1162_vm5, %v3785_v26, %v3787_v58  ;;  %v4729_v37 = vld [vmem:[%s6201_s16 + $0x8] sm:$0xf] }
 0x739   : > { %v3796_v20 = vmul.f32 %v3791_v16, %v5354_v27  ;;  %v3797_v47 = vmul.f32 %v3790_v3, %v5366_v38  ;;  %4735 = vmatprep.subr.msk.bf16.mxu0 %vm627_vm0, %v3799_v50  ;;  %v3906_v27 = vpack.c.bf16 %v5907_v51, %v5907_v51 }
 0x73a   : > { %v3798_v46 = vpack.c.bf16 %v3794_v23, %v3794_v23  ;;  %v4013_v28 = vpop.permute.xlu0 %4012 }
 0x73b   : > { %v3801_v4 = vpack.c.bf16 %v3797_v47, %v3797_v47  ;;  %v3800_v7 = vpack.c.bf16 %v3796_v20, %v3796_v20  ;;  %v4015_v31 = vpop.permute.xlu1 %4014 }
 0x73c   : > { %v3808_v11 = vsel %vm627_vm0, %v3798_v46, 0 }
 0x73d   : > { %4737 = vmatprep.subr.msk.bf16.mxu1 %vm627_vm0, %v3801_v4  ;;  %v3814_v38 = vsel %vm627_vm0, %v3800_v7, 0 }
 0x73e   : > { %v4017_v63 = vpop.permute.xlu0 %4016 }
 0x73f   : > { %v4019_v24 = vpop.permute.xlu1 %4018  ;;  %v4021_v51 = vsel %vm1414_vm6, %v4015_v31, %v4017_v63 }
 0x740   : > { %4731 = vmatmul.mubr.msk.bf16.vlgmr.msra.gmra.mrb[20].mxu0 %vm623_vm1, %v4729_v37  ;;  %v4023_v32 = vsel %vm1414_vm6, %v4019_v24, %v4013_v28  ;;  %v4025_v36 = vmul.f32 %v4021_v51, %v5403_v48  ;;  %v4022_v48 = vsel %vm1414_vm6, %v4013_v28, %v4015_v31  ;;  %v4020_v57 = vsel %vm1414_vm6, %v4017_v63, %v4019_v24 }
 0x741   : > { %3820 = vmatpush1.bf16.msra.mxu0 %v3808_v11  ;;  %4733 = vmatmul.mubr.msk.bf16.vlgmr.msra.gmra.mrb[20].mxu1 %vm623_vm1, %v4729_v37  ;;  %v4027_v14 = vmul.f32 %v4023_v32, %v5406_v18  ;;  %v3921_v18 = vsel %vm627_vm0, %v3907_v19, 0  ;;  %v4024_v21 = vmul.f32 %v4022_v48, %v5422_v34  ;;  %v4026_v60 = vmul.f32 %v4020_v57, %v5426_v39  ;;  %v4739_v34 = vld [vmem:[%s6201_s16 + $0x10] sm:$0xf] }
 0x742   : > { %3861 = vmatpush1.bf16.msra.mxu1 %v3814_v38  ;;  %4740 = vmatprep.subr.msk.bf16.mxu0 %vm627_vm0, %v3906_v27  ;;  %v4136_v17 = vpop.permute.xlu0 %4135  ;;  %v4029_v56 = vpack.c.bf16 %v4025_v36, %v4025_v36 }
 0x743   : > { %4742 = vmatprep.subr.msk.bf16.mxu1 %vm627_vm0, %v3908_v33  ;;  %3851 = vmatprep.mubr.bf16.mxu0 %v6220_v29  ;;  %v4138_v15 = vpop.permute.xlu1 %4137  ;;  %v4031_v61 = vpack.c.bf16 %v4027_v14, %v4027_v14  ;;  %v4028_v2 = vpack.c.bf16 %v4024_v21, %v4024_v21  ;;  %v4030_v52 = vpack.c.bf16 %v4026_v60, %v4026_v60 }
 0x744   : > { %3892 = vmatprep.mubr.bf16.mxu1 %v6220_v29  ;;  %v4145_v50 = vsel %vm1559_vm7, %v4136_v17, %v4138_v15 }
 0x745   : > { %v4038_v39 = vsel %vm627_vm0, %v4028_v2, 0  ;;  %v4147_v3 = vmul.f32 %v4145_v50, %v5461_v13  ;;  %v4744_v13 = vld [vmem:[%s6201_s16 + $0x14] sm:$0xf] }
 0x746   : > { %v4140_v0 = vpop.permute.xlu0 %4139 }
 0x747   : > { %v4142_v10 = vpop.permute.xlu1 %4141  ;;  %v4144_v12 = vsel %vm1559_vm7, %v4138_v15, %v4140_v0  ;;  %v4151_v4 = vpack.c.bf16 %v4147_v3, %v4147_v3 }
 0x748   : > { %v4146_v8 = vsel %vm1559_vm7, %v4142_v10, %v4136_v17  ;;  %v4148_v26 = vmul.f32 %v4144_v12, %v5446_v53  ;;  %v4044_v53 = vsel %vm627_vm0, %v4030_v52, 0 }
 0x749   : > { %v4150_v6 = vmul.f32 %v4146_v8, %v5449_v54  ;;  %v4143_v54 = vsel %vm1559_vm7, %v4140_v0, %v4142_v10 }
 0x74a   : > { %v4259_v44 = vpop.permute.xlu0 %4258  ;;  %v4152_v9 = vpack.c.bf16 %v4148_v26, %v4148_v26  ;;  %v4149_v16 = vmul.f32 %v4143_v54, %v5470_v25  ;;  %v4161_v25 = vsel %vm627_vm0, %v4151_v4, 0 }
 0x74b   : > { %v4261_v62 = vpop.permute.xlu1 %4260  ;;  %v4154_v42 = vpack.c.bf16 %v4150_v6, %v4150_v6 }
 0x74c   : > { %4736 = vmatmul.mubr.msk.bf16.vlgmr.msra.gmra.mrb[20].mxu0 %vm623_vm1, %v4734_v41  ;;  %v4153_v7 = vpack.c.bf16 %v4149_v16, %v4149_v16  ;;  %v4268_v27 = vsel %vm1704_vm8, %v4259_v44, %v4261_v62 }
 0x74d   : > { %3927 = vmatpush1.bf16.msra.mxu0 %v3915_v45  ;;  %4738 = vmatmul.mubr.msk.bf16.vlgmr.msra.gmra.mrb[20].mxu1 %vm623_vm1, %v4734_v41  ;;  %v4270_v24 = vmul.f32 %v4268_v27, %v5500_v59  ;;  %v4749_v59 = vld [vmem:[%s6201_s16 + $0x18] sm:$0xf] }
 0x74e   : > { %3968 = vmatpush1.bf16.msra.mxu1 %v3921_v18  ;;  %4745 = vmatprep.subr.msk.bf16.mxu0 %vm627_vm0, %v4029_v56  ;;  %v4263_v58 = vpop.permute.xlu0 %4262 }
 0x74f   : > { %4747 = vmatprep.subr.msk.bf16.mxu1 %vm627_vm0, %v4031_v61  ;;  %3958 = vmatprep.mubr.bf16.mxu0 %v6220_v29  ;;  %v4265_v23 = vpop.permute.xlu1 %4264  ;;  %v4267_v20 = vsel %vm1704_vm8, %v4261_v62, %v4263_v58  ;;  %v4274_v17 = vpack.c.bf16 %v4270_v24, %v4270_v24 }
 0x750   : > { %3999 = vmatprep.mubr.bf16.mxu1 %v6220_v29  ;;  %v4269_v47 = vsel %vm1704_vm8, %v4265_v23, %v4259_v44  ;;  %v4271_v46 = vmul.f32 %v4267_v20, %v5484_v35  ;;  %v4167_v35 = vsel %vm627_vm0, %v4153_v7, 0 }
 0x751   : > { %v4273_v31 = vmul.f32 %v4269_v47, %v5490_v40  ;;  %v4266_v40 = vsel %vm1704_vm8, %v4263_v58, %v4265_v23 }
 0x752   : > { %v4382_v28 = vpop.permute.xlu0 %4381  ;;  %v4275_v11 = vpack.c.bf16 %v4271_v46, %v4271_v46  ;;  %v4272_v51 = vmul.f32 %v4266_v40, %v5507_v5  ;;  %v4284_v5 = vsel %vm627_vm0, %v4274_v17, 0 }
 0x753   : > { %v4384_v37 = vpop.permute.xlu1 %4383  ;;  %v4277_v38 = vpack.c.bf16 %v4273_v31, %v4273_v31 }
 0x754   : > { %v4276_v14 = vpack.c.bf16 %v4272_v51, %v4272_v51  ;;  %v4391_v19 = vsel %vm1849_vm9, %v4382_v28, %v4384_v37 }
 0x755   : > { %v4393_v45 = vmul.f32 %v4391_v19, %v5539_v43  ;;  %v4759_v43 = vld [vmem:[%s6201_s16 + $0x20] sm:$0xf] }
 0x756   : > { %v4386_v33 = vpop.permute.xlu0 %4385 }
 0x757   : > { %v4388_v63 = vpop.permute.xlu1 %4387  ;;  %v4390_v32 = vsel %vm1849_vm9, %v4384_v37, %v4386_v33  ;;  %v4397_v61 = vpack.c.bf16 %v4393_v45, %v4393_v45 }
 0x758   : > { %4741 = vmatmul.mubr.msk.bf16.vlgmr.msra.gmra.mrb[20].mxu0 %vm623_vm1, %v4739_v34  ;;  %v4392_v36 = vsel %vm1849_vm9, %v4388_v63, %v4382_v28  ;;  %v4394_v1 = vmul.f32 %v4390_v32, %v5522_v22  ;;  %v4290_v22 = vsel %vm627_vm0, %v4276_v14, 0 }
 0x759   : > { %4050 = vmatpush1.bf16.msra.mxu0 %v4038_v39  ;;  %4743 = vmatmul.mubr.msk.bf16.vlgmr.msra.gmra.mrb[20].mxu1 %vm623_vm1, %v4739_v34  ;;  %v4396_v15 = vmul.f32 %v4392_v36, %v5529_v30  ;;  %v4389_v30 = vsel %vm1849_vm9, %v4386_v33, %v4388_v63  ;;  %v4407_v57 = vsel %vm627_vm0, %v4397_v61, 0 }
 0x75a   : > { %4091 = vmatpush1.bf16.msra.mxu1 %v4044_v53  ;;  %4750 = vmatprep.subr.msk.bf16.mxu0 %vm627_vm0, %v4152_v9  ;;  %v4398_v41 = vpack.c.bf16 %v4394_v1, %v4394_v1  ;;  %v4395_v48 = vmul.f32 %v4389_v30, %v5546_v49 }
 0x75b   : > { %4752 = vmatprep.subr.msk.bf16.mxu1 %vm627_vm0, %v4154_v42  ;;  %4081 = vmatprep.mubr.bf16.mxu0 %v6220_v29  ;;  %v4400_v56 = vpack.c.bf16 %v4396_v15, %v4396_v15 }
 0x75c   : > { %4122 = vmatprep.mubr.bf16.mxu1 %v6220_v29  ;;  %v4399_v18 = vpack.c.bf16 %v4395_v48, %v4395_v48 }
 0x75e   : > { %v4413_v0 = vsel %vm627_vm0, %v4399_v18, 0 }
 0x764   : > { %4746 = vmatmul.mubr.msk.bf16.vlgmr.msra.gmra.mrb[20].mxu0 %vm623_vm1, %v4744_v13 }
 0x765   : > { %4173 = vmatpush1.bf16.msra.mxu0 %v4161_v25  ;;  %4748 = vmatmul.mubr.msk.bf16.vlgmr.msra.gmra.mrb[20].mxu1 %vm623_vm1, %v4744_v13 }
 0x766   : > { %4214 = vmatpush1.bf16.msra.mxu1 %v4167_v35  ;;  %4755 = vmatprep.subr.msk.bf16.mxu0 %vm627_vm0, %v4275_v11 }
 0x767   : > { %4757 = vmatprep.subr.msk.bf16.mxu1 %vm627_vm0, %v4277_v38  ;;  %4204 = vmatprep.mubr.bf16.mxu0 %v6220_v29 }
 0x768   : > { %4245 = vmatprep.mubr.bf16.mxu1 %v6220_v29 }
 0x770   : > { %4751 = vmatmul.mubr.msk.bf16.vlgmr.msra.gmra.mrb[20].mxu0 %vm623_vm1, %v4749_v59 }
 0x771   : > { %4296 = vmatpush1.bf16.msra.mxu0 %v4284_v5  ;;  %4753 = vmatmul.mubr.msk.bf16.vlgmr.msra.gmra.mrb[20].mxu1 %vm623_vm1, %v4749_v59 }
 0x772   : > { %4337 = vmatpush1.bf16.msra.mxu1 %v4290_v22  ;;  %4760 = vmatprep.subr.msk.bf16.mxu0 %vm627_vm0, %v4398_v41 }
 0x773   : > { %4762 = vmatprep.subr.msk.bf16.mxu1 %vm627_vm0, %v4400_v56  ;;  %4327 = vmatprep.mubr.bf16.mxu0 %v6220_v29 }
 0x774   : > { %4368 = vmatprep.mubr.bf16.mxu1 %v6220_v29 }
 0x77c   : > { %4756 = vmatmul.mubr.msk.bf16.vlgmr.msra.gmra.mrb[20].mxu0 %vm623_vm1, %v4754_v55 }
 0x77d   : > { %4419 = vmatpush1.bf16.msra.mxu0 %v4407_v57  ;;  %4758 = vmatmul.mubr.msk.bf16.vlgmr.msra.gmra.mrb[20].mxu1 %vm623_vm1, %v4754_v55 }
 0x77e   : > { %4460 = vmatpush1.bf16.msra.mxu1 %v4413_v0  ;;  %4450 = vmatprep.mubr.bf16.mxu0 %v6220_v29 }
 0x77f   : > { %4491 = vmatprep.mubr.bf16.mxu1 %v6220_v29 }
 0x788   : > { %4761 = vmatmul.mubr.msk.bf16.vlgmr.msra.gmra.mrb[20].mxu0 %vm623_vm1, %v4759_v43 }
 0x789   : > { %4763 = vmatmul.mubr.msk.bf16.vlgmr.msra.gmra.mrb[20].mxu1 %vm623_vm1, %v4759_v43 }
 0x85b   : > { %v4452_v49 = vpop.f32.mrb[20].mxu0 }
 0x85c   : > { %4504 = vst [vmem:[#allocation2 + $0x60] sm:$0xff] %v4452_v49  ;;  %v4454_v10 = vpop.f32.mrb[21].mxu0  ;;  %v4493_v21 = vpop.f32.mrb[20].mxu1 }
 0x85d   : > { %4505 = vst [vmem:[#allocation2 + $0x68] sm:$0xff] %v4454_v10  ;;  %4506 = vst [vmem:[#allocation2 + $0x70] sm:$0xff] %v4493_v21  ;;  %v4456_v60 = vpop.f32.mrb[22].mxu0  ;;  %v4495_v29 = vpop.f32.mrb[21].mxu1 }
 0x85e   : > { %4507 = vst [vmem:[#allocation2 + $0x78] sm:$0xff] %v4495_v29  ;;  %v4457_v12 = vpop.f32.mrb[23].mxu0  ;;  %v4497_v8 = vpop.f32.mrb[22].mxu1 }
 0x85f   : > { %v4498_v2 = vpop.f32.mrb[23].mxu1 }
 0x863   : > { %v4522_v26 = vld [vmem:[#allocation2 + $0x60] sm:$0xf] }
 0x864   : > { %4524 = vst [vmem:[%s5120_s20 + $0x10] sm:$0xf] %v4522_v26  ;;  %v4523_v44 = vld [vmem:[#allocation2 + $0x68] sm:$0xf]  ;;  %v4541_v52 = vld [vmem:[#allocation2 + $0x70] sm:$0xf] }
 0x865   : > { %4525 = vst [vmem:[%s5120_s20 + $0x18] sm:$0xf] %v4523_v44  ;;  %4768 = vst [vmem:[%s5120_s20 + $0x30] sm:$0xf] %v4541_v52  ;;  %v4542_v6 = vld [vmem:[#allocation2 + $0x78] sm:$0xf] }
 0x866   : > { %4769 = vst [vmem:[%s5120_s20 + $0x38] sm:$0xf] %v4542_v6 }
 0x867 PF: > { %s27_s22 = sadd.s32 1, %s4994_s22  }
 0x868   : > { %p24_p4 = scmp.ge.s32.totalorder %s27_s22, 4  }
 0x86a   :  { %26 = sbr.rel (!%p24_p4) target bundleno = 3 (0x3), region = 151 }

</bundles_post_ra>
